<compile_context>
chip_gen: v5e
topology: v5e:2x2
jax: 0.10.0
libtpu: 0.0.40
codegen_flags: <defaults>
</compile_context>

<pallas_src>
import jax
import jax.numpy as jnp
from jax.experimental import pallas as pl
from jax.experimental.pallas import tpu as pltpu

BN_EPS = 1e-5


# ----------------------------------------------------------------------------
# Fused branch kernel: 6 x (ReLU -> Conv1d -> BN) + AdaptiveAvgPool1d(1) in VMEM
# ----------------------------------------------------------------------------
def _make_branch_kernel(layer_cfg, pc):
    """layer_cfg: tuple of (K, stride, L_in, L_out) per layer (all static).
    pc = pack * c_pad (lane width of the packed activations)."""
    n_layers = len(layer_cfg)

    def _im2col_slab(load_fn, k_taps, stride, l_out):
        # load_fn(start, length, stride) -> (length, pc) f32 value.
        if stride == 1:
            full = load_fn(0, k_taps - 1 + l_out, 1)            # one load pass per layer
            taps = [full[k:k + l_out, :] for k in range(k_taps)]
        else:
            # Phase compaction: `stride` strided reads, then unit-stride value slices,
            # instead of k_taps strided reads.
            phases = []
            for r in range(min(stride, k_taps)):
                l_r = (k_taps - 1 - r) // stride + l_out
                phases.append(load_fn(r, l_r, stride))
            taps = [phases[k % stride][k // stride:k // stride + l_out, :]
                    for k in range(k_taps)]
        return jnp.concatenate(taps, axis=-1)                   # (l_out, k_taps*pc)

    def kernel(*refs):
        x_ref = refs[0]                                         # (L0, pc) f32
        w_refs = refs[1:1 + n_layers]                           # each (K_l*pc, pc) bf16
        s_refs = refs[1 + n_layers:1 + 2 * n_layers]            # each (1, pc) f32
        o_ref = refs[1 + 2 * n_layers]                          # (1, pc) f32
        bufs = (refs[2 + 2 * n_layers], refs[3 + 2 * n_layers])  # f32 ping-pong scratch

        cur = 0
        for l, (k_taps, stride, l_in, l_out) in enumerate(layer_cfg):
            if l == 0:
                # Layer 0 reads straight from the input block; ReLUConvBn starts with a
                # ReLU, so fuse it into the load (no copy of x into scratch).
                def load_fn(start, length, st):
                    xs = (x_ref[pl.ds(start, length), :] if st == 1 else
                          x_ref[pl.ds(start, length, stride=st), :])
                    return jnp.maximum(xs, 0.0)
            else:
                # Activations in `src` were stored already ReLU'd by the previous layer.
                src = bufs[cur]

                def load_fn(start, length, st, src=src):
                    return (src[pl.ds(start, length), :] if st == 1 else
                            src[pl.ds(start, length, stride=st), :])

            slab = _im2col_slab(load_fn, k_taps, stride, l_out)
            # Single MXU dot per layer (bf16 operands, f32 accumulation).  BN scale is
            # folded into the weights; the shift is a single VPU add.
            y = jnp.dot(slab.astype(jnp.bfloat16), w_refs[l][...],
                        preferred_element_type=jnp.float32) + s_refs[l][...]
            if l < n_layers - 1:
                # Fuse the next layer's leading ReLU into this store.
                bufs[1 - cur][0:l_out, :] = jnp.maximum(y, 0.0)
                cur = 1 - cur
            else:
                # AdaptiveAvgPool1d(1): mean over the remaining temporal length (un-ReLU'd).
                o_ref[...] = jnp.mean(y, axis=0, keepdims=True)

    return kernel


def _branch_call(x, weights, shifts, layer_cfg):
    """x: (G, n_groups, L0, PC) f32; weights[l]: (G, K_l*PC, PC) bf16;
    shifts[l]: (G, 1, PC) f32.  Returns pooled features (G, n_groups, 1, PC) f32."""
    G, n_groups, L0, PC = x.shape
    kernel = _make_branch_kernel(tuple(layer_cfg), PC)
    l_buf = max(cfg[3] for cfg in layer_cfg)        # largest stored activation length

    in_specs = [pl.BlockSpec((None, None, L0, PC), lambda g, b: (g, b, 0, 0))]
    for w in weights:
        in_specs.append(pl.BlockSpec((None, w.shape[1], PC), lambda g, b: (g, 0, 0)))
    for s in shifts:
        in_specs.append(pl.BlockSpec((None, 1, PC), lambda g, b: (g, 0, 0)))
    out_specs = pl.BlockSpec((None, None, 1, PC), lambda g, b: (g, b, 0, 0))

    return pl.pallas_call(
        kernel,
        grid=(G, n_groups),
        in_specs=in_specs,
        out_specs=out_specs,
        out_shape=jax.ShapeDtypeStruct((G, n_groups, 1, PC), jnp.float32),
        scratch_shapes=[pltpu.VMEM((l_buf, PC), jnp.float32),
                        pltpu.VMEM((l_buf, PC), jnp.float32)],
        compiler_params=pltpu.CompilerParams(
            dimension_semantics=("parallel", "parallel")),
    )(x, *weights, *shifts)


# ----------------------------------------------------------------------------
# Head kernel: Linear(48->128) -> ReLU -> Linear(128->2, lane-padded) -> Softmax
# ----------------------------------------------------------------------------
def _head_kernel(x_ref, w1_ref, b1_ref, w2_ref, b2_ref, o_ref):
    h = jnp.dot(x_ref[...], w1_ref[...], preferred_element_type=jnp.float32) + b1_ref[...]
    h = jnp.maximum(h, 0.0)
    logits = jnp.dot(h, w2_ref[...], preferred_element_type=jnp.float32) + b2_ref[...]
    m = jnp.max(logits, axis=-1, keepdims=True)
    e = jnp.exp(logits - m)                         # padded classes: exp(-1e30 - m) == 0
    o_ref[...] = e / jnp.sum(e, axis=-1, keepdims=True)


def _head_call(feats, w1t, b1, w2_pad, b2_pad):
    B = feats.shape[0]
    H = w1t.shape[1]
    # Tiny problem: whole arrays fit in VMEM (no grid).  Output is a lane-dense (B, 128)
    # slab; the real 2 class probabilities are sliced out by the caller.
    return pl.pallas_call(
        _head_kernel,
        out_shape=jax.ShapeDtypeStruct((B, H), jnp.float32),
    )(feats, w1t, b1, w2_pad, b2_pad)


# ----------------------------------------------------------------------------
# Trace-time parameter folding / layout prep (plain JAX, runs once inside jit)
# ----------------------------------------------------------------------------
def _fold_layer(layer_params, c_pad, pack):
    """Fold eval-mode BN into the conv weight, pad channels to c_pad, replicate
    block-diagonally over `pack` lane-packed samples, flatten taps for a single dot."""
    w, gamma, beta, mean, var = layer_params            # w: (Cout, Cin, K) torch layout
    cout, cin, k = w.shape
    inv_std = gamma / jnp.sqrt(var + BN_EPS)
    w_eff = jnp.transpose(w, (2, 1, 0)) * inv_std[None, None, :]          # (K, Cin, Cout)
    w_pad = jnp.zeros((k, c_pad, c_pad), jnp.float32).at[:, :cin, :cout].set(w_eff)
    eye = jnp.eye(pack, dtype=jnp.float32)
    w_bd = jnp.einsum('pq,kab->kpaqb', eye, w_pad)                        # (K,P,C,P,C)
    w_flat = w_bd.reshape(k * pack * c_pad, pack * c_pad).astype(jnp.bfloat16)
    shift = jnp.zeros((c_pad,), jnp.float32).at[:cout].set(beta - mean * inv_std)
    shift = jnp.tile(shift, pack)[None, :]                                # (1, P*C)
    return w_flat, shift


def _prep_branch_params(layer_param_list, c_pad, pack):
    ws, ss = zip(*[_fold_layer(p, c_pad, pack) for p in layer_param_list])
    return list(ws), list(ss)


def _prep_input(x, c_pad, pack):
    """(B, Cin, L) -> (n_groups, L, pack*c_pad): channels-last, batch lane-packed, f32."""
    b, cin, l = x.shape
    b_pad = -(-b // pack) * pack
    xt = jnp.transpose(x, (0, 2, 1))                                      # (B, L, Cin)
    xt = jnp.pad(xt, ((0, b_pad - b), (0, 0), (0, c_pad - cin)))
    xt = xt.reshape(b_pad // pack, pack, l, c_pad)
    xt = jnp.transpose(xt, (0, 2, 1, 3)).reshape(b_pad // pack, l, pack * c_pad)
    return xt.astype(jnp.float32)


def _unpack_features(y, batch, pack, c_pad):
    """(G, n_groups, 1, pack*c_pad) -> (G, batch, c_pad)."""
    g, ng = y.shape[0], y.shape[1]
    y = y.reshape(g, ng, pack, c_pad).reshape(g, ng * pack, c_pad)
    return y[:, :batch, :]


def _layer_cfg(length, kernel_sizes, strides):
    cfg = []
    for k, s in zip(kernel_sizes, strides):
        l_out = (length - k) // s + 1
        cfg.append((k, s, length, l_out))
        length = l_out
    return tuple(cfg)


def lf_cnn_forward(params, eeg_x, nirs_oxy_x, nirs_deoxy_x):
    batch = eeg_x.shape[0]
    eeg_ch, nirs_ch = eeg_x.shape[1], nirs_oxy_x.shape[1]
    c_eeg, c_nirs = eeg_ch * 4, nirs_ch * 4             # max channel width per branch

    # Lane-pack batch samples via block-diagonal weights; cap at 128 lanes (v5e MXU /
    # vreg width).  Extra batch spills onto the second grid axis.
    p_eeg = max(1, min(batch, 128 // c_eeg))
    p_nirs = max(1, min(batch, 128 // c_nirs))

    eeg_ks = tuple(p[0].shape[2] for p in params["eeg"])
    nirs_ks = tuple(p[0].shape[2] for p in params["oxy"])
    eeg_cfg = _layer_cfg(eeg_x.shape[2], eeg_ks, params["eeg_strides"])
    nirs_cfg = _layer_cfg(nirs_oxy_x.shape[2], nirs_ks, params["nirs_strides"])

    eeg_w, eeg_s = _prep_branch_params(params["eeg"], c_eeg, p_eeg)
    oxy_w, oxy_s = _prep_branch_params(params["oxy"], c_nirs, p_nirs)
    deo_w, deo_s = _prep_branch_params(params["deoxy"], c_nirs, p_nirs)

    eeg_in = _prep_input(eeg_x, c_eeg, p_eeg)[None]                      # (1, n_g, L, PC)
    nirs_in = jnp.stack([_prep_input(nirs_oxy_x, c_nirs, p_nirs),
                         _prep_input(nirs_deoxy_x, c_nirs, p_nirs)], 0)  # (2, n_g, L, PC)

    eeg_ws = [w[None] for w in eeg_w]
    eeg_ss = [s[None] for s in eeg_s]
    nirs_ws = [jnp.stack([a, b], axis=0) for a, b in zip(oxy_w, deo_w)]
    nirs_ss = [jnp.stack([a, b], axis=0) for a, b in zip(oxy_s, deo_s)]

    y_eeg = _branch_call(eeg_in, eeg_ws, eeg_ss, eeg_cfg)        # (1, n_g, 1, P*C)
    y_nirs = _branch_call(nirs_in, nirs_ws, nirs_ss, nirs_cfg)   # (2, n_g, 1, P*C)

    x1 = _unpack_features(y_eeg, batch, p_eeg, c_eeg)[0]         # (B, c_eeg)
    x23 = _unpack_features(y_nirs, batch, p_nirs, c_nirs)        # (2, B, c_nirs)
    feats = jnp.concatenate([x1, x23[0], x23[1]], axis=-1)       # torch.cat([x1,x2,x3], 1)

    w1, b1, w2, b2 = params["head"]
    hidden, n_cls = w1.shape[0], w2.shape[0]
    # Lane-dense head output slab: pad the classifier to `hidden` columns and give the
    # padded classes a -1e30 bias so the softmax ignores them.
    w2_pad = jnp.zeros((hidden, hidden), jnp.float32).at[:, :n_cls].set(w2.T)
    b2_pad = jnp.full((1, hidden), -1e30, jnp.float32).at[0, :n_cls].set(b2)
    probs = _head_call(feats, w1.T, b1[None, :], w2_pad, b2_pad)
    return probs[:, :n_cls]


# ----------------------------------------------------------------------------
# Pure-JAX f32 reference (same semantics, used only for a tolerance check)
# ----------------------------------------------------------------------------
def _ref_forward(params, eeg_x, oxy_x, deoxy_x):
    def branch(x, layers, strides):
        for (w, gamma, beta, mean, var), s in zip(layers, strides):
            x = jnp.maximum(x, 0.0)
            x = jax.lax.conv_general_dilated(
                x, w, window_strides=(s,), padding="VALID",
                dimension_numbers=("NCH", "OIH", "NCH"))
            inv = gamma / jnp.sqrt(var + BN_EPS)
            x = x * inv[None, :, None] + (beta - mean * inv)[None, :, None]
        return jnp.mean(x, axis=-1)                  # AdaptiveAvgPool1d(1) + squeeze
    x1 = branch(eeg_x, params["eeg"], params["eeg_strides"])
    x2 = branch(oxy_x, params["oxy"], params["nirs_strides"])
    x3 = branch(deoxy_x, params["deoxy"], params["nirs_strides"])
    feats = jnp.concatenate([x1, x2, x3], axis=1)
    w1, b1, w2, b2 = params["head"]
    h = jnp.maximum(feats @ w1.T + b1, 0.0)
    return jax.nn.softmax(h @ w2.T + b2, axis=-1)


# ----------------------------------------------------------------------------
# Deterministic parameter construction (matches the PyTorch module's configs)
# ----------------------------------------------------------------------------
def _make_conv_bn_params(key, cin, cout, k):
    kw, kg, kb, km, kv = jax.random.split(key, 5)
    w = jax.random.normal(kw, (cout, cin, k), jnp.float32) * 0.1
    gamma = 1.0 + 0.1 * jax.random.normal(kg, (cout,), jnp.float32)
    beta = 0.1 * jax.random.normal(kb, (cout,), jnp.float32)
    mean = 0.1 * jax.random.normal(km, (cout,), jnp.float32)
    var = jax.random.uniform(kv, (cout,), jnp.float32, 0.5, 1.5)
    return (w, gamma, beta, mean, var)


def make_params(key, eeg_ch, nirs_ch):
    eeg_cfg = [(eeg_ch, eeg_ch * 2, 9), (eeg_ch * 2, eeg_ch * 2, 3), (eeg_ch * 2, eeg_ch * 2, 3),
               (eeg_ch * 2, eeg_ch * 4, 9), (eeg_ch * 4, eeg_ch * 4, 3), (eeg_ch * 4, eeg_ch * 4, 3)]
    nirs_cfg = [(nirs_ch, nirs_ch * 2, 5), (nirs_ch * 2, nirs_ch * 2, 3), (nirs_ch * 2, nirs_ch * 2, 3),
                (nirs_ch * 2, nirs_ch * 4, 5), (nirs_ch * 4, nirs_ch * 4, 3), (nirs_ch * 4, nirs_ch * 4, 3)]
    eeg_strides = (4, 1, 1, 4, 1, 1)
    nirs_strides = (2, 1, 1, 1, 1, 1)

    keys = jax.random.split(key, 20)
    ki = iter(keys)
    params = {
        "eeg": [_make_conv_bn_params(next(ki), *c) for c in eeg_cfg],
        "oxy": [_make_conv_bn_params(next(ki), *c) for c in nirs_cfg],
        "deoxy": [_make_conv_bn_params(next(ki), *c) for c in nirs_cfg],
        "eeg_strides": eeg_strides,
        "nirs_strides": nirs_strides,
    }
    feat = eeg_ch * 4 + nirs_ch * 4 + nirs_ch * 4
    k1, k2 = next(ki), next(ki)
    w1 = jax.random.normal(k1, (128, feat), jnp.float32) * 0.1
    b1 = jnp.zeros((128,), jnp.float32)
    w2 = jax.random.normal(k2, (2, 128), jnp.float32) * 0.1
    b2 = jnp.zeros((2,), jnp.float32)
    params["head"] = (w1, b1, w2, b2)
    return params


# ----------------------------------------------------------------------------
if __name__ == "__main__":
    EEG_CH, NIRS_CH = 4, 4
    B = 2
    L_EEG, L_NIRS = 128, 32    # minimal lengths compatible with the conv stacks

    key = jax.random.PRNGKey(0)
    kp, k1, k2, k3 = jax.random.split(key, 4)

    params = make_params(kp, EEG_CH, NIRS_CH)
    eeg_x = jax.random.normal(k1, (B, EEG_CH, L_EEG), jnp.float32)
    oxy_x = jax.random.normal(k2, (B, NIRS_CH, L_NIRS), jnp.float32)
    deoxy_x = jax.random.normal(k3, (B, NIRS_CH, L_NIRS), jnp.float32)

    fwd = jax.jit(lambda a, b, c: lf_cnn_forward(params, a, b, c))
    out = jax.block_until_ready(fwd(eeg_x, oxy_x, deoxy_x))

    assert out.shape == (B, 2)
    assert bool(jnp.all(jnp.isfinite(out)))
    # Softmax rows sum to 1
    assert bool(jnp.allclose(jnp.sum(out, axis=-1), 1.0, atol=1e-5))
    # bf16-matmul kernel vs pure-f32 reference (loose tolerance by design)
    ref = _ref_forward(params, eeg_x, oxy_x, deoxy_x)
    assert bool(jnp.allclose(out, ref, atol=5e-2))
    print("KERNEL_OK")
</pallas_src>

<mosaic_0001>
module attributes {stable_mosaic.version = 11 : i64} {
  func.func @kernel(%arg0: i32, %arg1: i32, %arg2: memref<1x1x32x32xf32, #tpu.memory_space<vmem>>, %arg3: memref<1x160x32xbf16, #tpu.memory_space<vmem>>, %arg4: memref<1x96x32xbf16, #tpu.memory_space<vmem>>, %arg5: memref<1x96x32xbf16, #tpu.memory_space<vmem>>, %arg6: memref<1x160x32xbf16, #tpu.memory_space<vmem>>, %arg7: memref<1x96x32xbf16, #tpu.memory_space<vmem>>, %arg8: memref<1x96x32xbf16, #tpu.memory_space<vmem>>, %arg9: memref<1x1x32xf32, #tpu.memory_space<vmem>>, %arg10: memref<1x1x32xf32, #tpu.memory_space<vmem>>, %arg11: memref<1x1x32xf32, #tpu.memory_space<vmem>>, %arg12: memref<1x1x32xf32, #tpu.memory_space<vmem>>, %arg13: memref<1x1x32xf32, #tpu.memory_space<vmem>>, %arg14: memref<1x1x32xf32, #tpu.memory_space<vmem>>, %arg15: memref<1x1x1x32xf32, #tpu.memory_space<vmem>>, %arg16: memref<14x32xf32, #tpu.memory_space<vmem>>, %arg17: memref<14x32xf32, #tpu.memory_space<vmem>>) attributes {dimension_semantics = [#tpu.dimension_semantics<parallel>, #tpu.dimension_semantics<parallel>], iteration_bounds = array<i64: 2, 1>, scalar_prefetch = 0 : i64, scratch_operands = 2 : i64, tpu.core_type = #tpu.core_type<tc>, window_params = [{transform_indices = @transform_0, window_bounds = array<i64: 1, 1, 32, 32>}, {transform_indices = @transform_1, window_bounds = array<i64: 1, 160, 32>}, {transform_indices = @transform_2, window_bounds = array<i64: 1, 96, 32>}, {transform_indices = @transform_3, window_bounds = array<i64: 1, 96, 32>}, {transform_indices = @transform_4, window_bounds = array<i64: 1, 160, 32>}, {transform_indices = @transform_5, window_bounds = array<i64: 1, 96, 32>}, {transform_indices = @transform_6, window_bounds = array<i64: 1, 96, 32>}, {transform_indices = @transform_7, window_bounds = array<i64: 1, 1, 32>}, {transform_indices = @transform_8, window_bounds = array<i64: 1, 1, 32>}, {transform_indices = @transform_9, window_bounds = array<i64: 1, 1, 32>}, {transform_indices = @transform_10, window_bounds = array<i64: 1, 1, 32>}, {transform_indices = @transform_11, window_bounds = array<i64: 1, 1, 32>}, {transform_indices = @transform_12, window_bounds = array<i64: 1, 1, 32>}, {transform_indices = @transform_13, window_bounds = array<i64: 1, 1, 1, 32>}]} {
    %c0 = arith.constant 0 : index
    %c0_0 = arith.constant 0 : index
    %c0_1 = arith.constant 0 : index
    %c0_2 = arith.constant 0 : index
    %0 = tpu.strided_load %arg2[%c0, %c0_0, %c0_1, %c0_2] {strides = array<i32: 1, 1, 2, 1>} : memref<1x1x32x32xf32, #tpu.memory_space<vmem>>, vector<1x1x16x32xf32>
    %1 = vector.shape_cast %0 : vector<1x1x16x32xf32> to vector<16x32xf32>
    %cst = arith.constant 0.000000e+00 : f32
    %2 = vector.broadcast %cst : f32 to vector<16x32xf32>
    %3 = arith.maximumf %1, %2 : vector<16x32xf32>
    %c0_3 = arith.constant 0 : index
    %c0_4 = arith.constant 0 : index
    %c1 = arith.constant 1 : index
    %c0_5 = arith.constant 0 : index
    %4 = tpu.strided_load %arg2[%c0_3, %c0_4, %c1, %c0_5] {strides = array<i32: 1, 1, 2, 1>} : memref<1x1x32x32xf32, #tpu.memory_space<vmem>>, vector<1x1x15x32xf32>
    %5 = vector.shape_cast %4 : vector<1x1x15x32xf32> to vector<15x32xf32>
    %cst_6 = arith.constant 0.000000e+00 : f32
    %6 = vector.broadcast %cst_6 : f32 to vector<15x32xf32>
    %7 = arith.maximumf %5, %6 : vector<15x32xf32>
    %8 = vector.extract_strided_slice %3 {offsets = [0, 0], sizes = [14, 32], strides = [1, 1]} : vector<16x32xf32> to vector<14x32xf32>
    %9 = vector.extract_strided_slice %7 {offsets = [0, 0], sizes = [14, 32], strides = [1, 1]} : vector<15x32xf32> to vector<14x32xf32>
    %10 = vector.extract_strided_slice %3 {offsets = [1, 0], sizes = [14, 32], strides = [1, 1]} : vector<16x32xf32> to vector<14x32xf32>
    %11 = vector.extract_strided_slice %7 {offsets = [1, 0], sizes = [14, 32], strides = [1, 1]} : vector<15x32xf32> to vector<14x32xf32>
    %12 = vector.extract_strided_slice %3 {offsets = [2, 0], sizes = [14, 32], strides = [1, 1]} : vector<16x32xf32> to vector<14x32xf32>
    %13 = tpu.concatenate %8, %9, %10, %11, %12 in 1 : vector<14x32xf32>, vector<14x32xf32>, vector<14x32xf32>, vector<14x32xf32>, vector<14x32xf32> -> vector<14x160xf32>
    %14 = arith.truncf %13 : vector<14x160xf32> to vector<14x160xbf16>
    %c0_7 = arith.constant 0 : index
    %c0_8 = arith.constant 0 : index
    %c0_9 = arith.constant 0 : index
    %15 = vector.load %arg3[%c0_7, %c0_8, %c0_9] : memref<1x160x32xbf16, #tpu.memory_space<vmem>>, vector<1x160x32xbf16>
    %16 = vector.shape_cast %15 : vector<1x160x32xbf16> to vector<160x32xbf16>
    %cst_10 = arith.constant dense<0.000000e+00> : vector<14x32xf32>
    %17 = tpu.matmul %14, %16, %cst_10 {dimension_numbers = #tpu.dot_dimension_numbers<[1], [0], [0], [1], [0, 0, 1, 1], [], []>} : vector<14x160xbf16>, vector<160x32xbf16>, vector<14x32xf32> -> vector<14x32xf32>
    %c0_11 = arith.constant 0 : index
    %c0_12 = arith.constant 0 : index
    %c0_13 = arith.constant 0 : index
    %18 = vector.load %arg9[%c0_11, %c0_12, %c0_13] : memref<1x1x32xf32, #tpu.memory_space<vmem>>, vector<1x1x32xf32>
    %19 = vector.shape_cast %18 : vector<1x1x32xf32> to vector<1x32xf32>
    %20 = vector.broadcast %19 : vector<1x32xf32> to vector<14x32xf32>
    %21 = arith.addf %17, %20 : vector<14x32xf32>
    %cst_14 = arith.constant 0.000000e+00 : f32
    %22 = vector.broadcast %cst_14 : f32 to vector<14x32xf32>
    %23 = arith.maximumf %21, %22 : vector<14x32xf32>
    %c0_15 = arith.constant 0 : index
    %c0_16 = arith.constant 0 : index
    %24 = vector.load %arg17[%c0_15, %c0_16] : memref<14x32xf32, #tpu.memory_space<vmem>>, vector<14x32xf32>
    tpu.vector_store %arg17[%c0_15, %c0_16], %23 {strides = array<i32>} : memref<14x32xf32, #tpu.memory_space<vmem>>, vector<14x32xf32>,
    %c0_17 = arith.constant 0 : index
    %c0_18 = arith.constant 0 : index
    %25 = vector.load %arg17[%c0_17, %c0_18] : memref<14x32xf32, #tpu.memory_space<vmem>>, vector<14x32xf32>
    %26 = vector.extract_strided_slice %25 {offsets = [0, 0], sizes = [12, 32], strides = [1, 1]} : vector<14x32xf32> to vector<12x32xf32>
    %27 = vector.extract_strided_slice %25 {offsets = [1, 0], sizes = [12, 32], strides = [1, 1]} : vector<14x32xf32> to vector<12x32xf32>
    %28 = vector.extract_strided_slice %25 {offsets = [2, 0], sizes = [12, 32], strides = [1, 1]} : vector<14x32xf32> to vector<12x32xf32>
    %29 = tpu.concatenate %26, %27, %28 in 1 : vector<12x32xf32>, vector<12x32xf32>, vector<12x32xf32> -> vector<12x96xf32>
    %30 = arith.truncf %29 : vector<12x96xf32> to vector<12x96xbf16>
    %c0_19 = arith.constant 0 : index
    %c0_20 = arith.constant 0 : index
    %c0_21 = arith.constant 0 : index
    %31 = vector.load %arg4[%c0_19, %c0_20, %c0_21] : memref<1x96x32xbf16, #tpu.memory_space<vmem>>, vector<1x96x32xbf16>
    %32 = vector.shape_cast %31 : vector<1x96x32xbf16> to vector<96x32xbf16>
    %cst_22 = arith.constant dense<0.000000e+00> : vector<12x32xf32>
    %33 = tpu.matmul %30, %32, %cst_22 {dimension_numbers = #tpu.dot_dimension_numbers<[1], [0], [0], [1], [0, 0, 1, 1], [], []>} : vector<12x96xbf16>, vector<96x32xbf16>, vector<12x32xf32> -> vector<12x32xf32>
    %c0_23 = arith.constant 0 : index
    %c0_24 = arith.constant 0 : index
    %c0_25 = arith.constant 0 : index
    %34 = vector.load %arg10[%c0_23, %c0_24, %c0_25] : memref<1x1x32xf32, #tpu.memory_space<vmem>>, vector<1x1x32xf32>
    %35 = vector.shape_cast %34 : vector<1x1x32xf32> to vector<1x32xf32>
    %36 = vector.broadcast %35 : vector<1x32xf32> to vector<12x32xf32>
    %37 = arith.addf %33, %36 : vector<12x32xf32>
    %cst_26 = arith.constant 0.000000e+00 : f32
    %38 = vector.broadcast %cst_26 : f32 to vector<12x32xf32>
    %39 = arith.maximumf %37, %38 : vector<12x32xf32>
    %c0_27 = arith.constant 0 : index
    %c0_28 = arith.constant 0 : index
    %40 = vector.load %arg16[%c0_27, %c0_28] : memref<14x32xf32, #tpu.memory_space<vmem>>, vector<12x32xf32>
    tpu.vector_store %arg16[%c0_27, %c0_28], %39 {strides = array<i32>} : memref<14x32xf32, #tpu.memory_space<vmem>>, vector<12x32xf32>,
    %c0_29 = arith.constant 0 : index
    %c0_30 = arith.constant 0 : index
    %41 = vector.load %arg16[%c0_29, %c0_30] : memref<14x32xf32, #tpu.memory_space<vmem>>, vector<12x32xf32>
    %42 = vector.extract_strided_slice %41 {offsets = [0, 0], sizes = [10, 32], strides = [1, 1]} : vector<12x32xf32> to vector<10x32xf32>
    %43 = vector.extract_strided_slice %41 {offsets = [1, 0], sizes = [10, 32], strides = [1, 1]} : vector<12x32xf32> to vector<10x32xf32>
    %44 = vector.extract_strided_slice %41 {offsets = [2, 0], sizes = [10, 32], strides = [1, 1]} : vector<12x32xf32> to vector<10x32xf32>
    %45 = tpu.concatenate %42, %43, %44 in 1 : vector<10x32xf32>, vector<10x32xf32>, vector<10x32xf32> -> vector<10x96xf32>
    %46 = arith.truncf %45 : vector<10x96xf32> to vector<10x96xbf16>
    %c0_31 = arith.constant 0 : index
    %c0_32 = arith.constant 0 : index
    %c0_33 = arith.constant 0 : index
    %47 = vector.load %arg5[%c0_31, %c0_32, %c0_33] : memref<1x96x32xbf16, #tpu.memory_space<vmem>>, vector<1x96x32xbf16>
    %48 = vector.shape_cast %47 : vector<1x96x32xbf16> to vector<96x32xbf16>
    %cst_34 = arith.constant dense<0.000000e+00> : vector<10x32xf32>
    %49 = tpu.matmul %46, %48, %cst_34 {dimension_numbers = #tpu.dot_dimension_numbers<[1], [0], [0], [1], [0, 0, 1, 1], [], []>} : vector<10x96xbf16>, vector<96x32xbf16>, vector<10x32xf32> -> vector<10x32xf32>
    %c0_35 = arith.constant 0 : index
    %c0_36 = arith.constant 0 : index
    %c0_37 = arith.constant 0 : index
    %50 = vector.load %arg11[%c0_35, %c0_36, %c0_37] : memref<1x1x32xf32, #tpu.memory_space<vmem>>, vector<1x1x32xf32>
    %51 = vector.shape_cast %50 : vector<1x1x32xf32> to vector<1x32xf32>
    %52 = vector.broadcast %51 : vector<1x32xf32> to vector<10x32xf32>
    %53 = arith.addf %49, %52 : vector<10x32xf32>
    %cst_38 = arith.constant 0.000000e+00 : f32
    %54 = vector.broadcast %cst_38 : f32 to vector<10x32xf32>
    %55 = arith.maximumf %53, %54 : vector<10x32xf32>
    %c0_39 = arith.constant 0 : index
    %c0_40 = arith.constant 0 : index
    %56 = vector.load %arg17[%c0_39, %c0_40] : memref<14x32xf32, #tpu.memory_space<vmem>>, vector<10x32xf32>
    tpu.vector_store %arg17[%c0_39, %c0_40], %55 {strides = array<i32>} : memref<14x32xf32, #tpu.memory_space<vmem>>, vector<10x32xf32>,
    %c0_41 = arith.constant 0 : index
    %c0_42 = arith.constant 0 : index
    %57 = vector.load %arg17[%c0_41, %c0_42] : memref<14x32xf32, #tpu.memory_space<vmem>>, vector<10x32xf32>
    %58 = vector.extract_strided_slice %57 {offsets = [0, 0], sizes = [6, 32], strides = [1, 1]} : vector<10x32xf32> to vector<6x32xf32>
    %59 = vector.extract_strided_slice %57 {offsets = [1, 0], sizes = [6, 32], strides = [1, 1]} : vector<10x32xf32> to vector<6x32xf32>
    %60 = vector.extract_strided_slice %57 {offsets = [2, 0], sizes = [6, 32], strides = [1, 1]} : vector<10x32xf32> to vector<6x32xf32>
    %61 = vector.extract_strided_slice %57 {offsets = [3, 0], sizes = [6, 32], strides = [1, 1]} : vector<10x32xf32> to vector<6x32xf32>
    %62 = vector.extract_strided_slice %57 {offsets = [4, 0], sizes = [6, 32], strides = [1, 1]} : vector<10x32xf32> to vector<6x32xf32>
    %63 = tpu.concatenate %58, %59, %60, %61, %62 in 1 : vector<6x32xf32>, vector<6x32xf32>, vector<6x32xf32>, vector<6x32xf32>, vector<6x32xf32> -> vector<6x160xf32>
    %64 = arith.truncf %63 : vector<6x160xf32> to vector<6x160xbf16>
    %c0_43 = arith.constant 0 : index
    %c0_44 = arith.constant 0 : index
    %c0_45 = arith.constant 0 : index
    %65 = vector.load %arg6[%c0_43, %c0_44, %c0_45] : memref<1x160x32xbf16, #tpu.memory_space<vmem>>, vector<1x160x32xbf16>
    %66 = vector.shape_cast %65 : vector<1x160x32xbf16> to vector<160x32xbf16>
    %cst_46 = arith.constant dense<0.000000e+00> : vector<6x32xf32>
    %67 = tpu.matmul %64, %66, %cst_46 {dimension_numbers = #tpu.dot_dimension_numbers<[1], [0], [0], [1], [0, 0, 1, 1], [], []>} : vector<6x160xbf16>, vector<160x32xbf16>, vector<6x32xf32> -> vector<6x32xf32>
    %c0_47 = arith.constant 0 : index
    %c0_48 = arith.constant 0 : index
    %c0_49 = arith.constant 0 : index
    %68 = vector.load %arg12[%c0_47, %c0_48, %c0_49] : memref<1x1x32xf32, #tpu.memory_space<vmem>>, vector<1x1x32xf32>
    %69 = vector.shape_cast %68 : vector<1x1x32xf32> to vector<1x32xf32>
    %70 = vector.broadcast %69 : vector<1x32xf32> to vector<6x32xf32>
    %71 = arith.addf %67, %70 : vector<6x32xf32>
    %cst_50 = arith.constant 0.000000e+00 : f32
    %72 = vector.broadcast %cst_50 : f32 to vector<6x32xf32>
    %73 = arith.maximumf %71, %72 : vector<6x32xf32>
    %c0_51 = arith.constant 0 : index
    %c0_52 = arith.constant 0 : index
    %74 = vector.load %arg16[%c0_51, %c0_52] : memref<14x32xf32, #tpu.memory_space<vmem>>, vector<6x32xf32>
    tpu.vector_store %arg16[%c0_51, %c0_52], %73 {strides = array<i32>} : memref<14x32xf32, #tpu.memory_space<vmem>>, vector<6x32xf32>,
    %c0_53 = arith.constant 0 : index
    %c0_54 = arith.constant 0 : index
    %75 = vector.load %arg16[%c0_53, %c0_54] : memref<14x32xf32, #tpu.memory_space<vmem>>, vector<6x32xf32>
    %76 = vector.extract_strided_slice %75 {offsets = [0, 0], sizes = [4, 32], strides = [1, 1]} : vector<6x32xf32> to vector<4x32xf32>
    %77 = vector.extract_strided_slice %75 {offsets = [1, 0], sizes = [4, 32], strides = [1, 1]} : vector<6x32xf32> to vector<4x32xf32>
    %78 = vector.extract_strided_slice %75 {offsets = [2, 0], sizes = [4, 32], strides = [1, 1]} : vector<6x32xf32> to vector<4x32xf32>
    %79 = tpu.concatenate %76, %77, %78 in 1 : vector<4x32xf32>, vector<4x32xf32>, vector<4x32xf32> -> vector<4x96xf32>
    %80 = arith.truncf %79 : vector<4x96xf32> to vector<4x96xbf16>
    %c0_55 = arith.constant 0 : index
    %c0_56 = arith.constant 0 : index
    %c0_57 = arith.constant 0 : index
    %81 = vector.load %arg7[%c0_55, %c0_56, %c0_57] : memref<1x96x32xbf16, #tpu.memory_space<vmem>>, vector<1x96x32xbf16>
    %82 = vector.shape_cast %81 : vector<1x96x32xbf16> to vector<96x32xbf16>
    %cst_58 = arith.constant dense<0.000000e+00> : vector<4x32xf32>
    %83 = tpu.matmul %80, %82, %cst_58 {dimension_numbers = #tpu.dot_dimension_numbers<[1], [0], [0], [1], [0, 0, 1, 1], [], []>} : vector<4x96xbf16>, vector<96x32xbf16>, vector<4x32xf32> -> vector<4x32xf32>
    %c0_59 = arith.constant 0 : index
    %c0_60 = arith.constant 0 : index
    %c0_61 = arith.constant 0 : index
    %84 = vector.load %arg13[%c0_59, %c0_60, %c0_61] : memref<1x1x32xf32, #tpu.memory_space<vmem>>, vector<1x1x32xf32>
    %85 = vector.shape_cast %84 : vector<1x1x32xf32> to vector<1x32xf32>
    %86 = vector.broadcast %85 : vector<1x32xf32> to vector<4x32xf32>
    %87 = arith.addf %83, %86 : vector<4x32xf32>
    %cst_62 = arith.constant 0.000000e+00 : f32
    %88 = vector.broadcast %cst_62 : f32 to vector<4x32xf32>
    %89 = arith.maximumf %87, %88 : vector<4x32xf32>
    %c0_63 = arith.constant 0 : index
    %c0_64 = arith.constant 0 : index
    %90 = vector.load %arg17[%c0_63, %c0_64] : memref<14x32xf32, #tpu.memory_space<vmem>>, vector<4x32xf32>
    tpu.vector_store %arg17[%c0_63, %c0_64], %89 {strides = array<i32>} : memref<14x32xf32, #tpu.memory_space<vmem>>, vector<4x32xf32>,
    %c0_65 = arith.constant 0 : index
    %c0_66 = arith.constant 0 : index
    %91 = vector.load %arg17[%c0_65, %c0_66] : memref<14x32xf32, #tpu.memory_space<vmem>>, vector<4x32xf32>
    %92 = vector.extract_strided_slice %91 {offsets = [0, 0], sizes = [2, 32], strides = [1, 1]} : vector<4x32xf32> to vector<2x32xf32>
    %93 = vector.extract_strided_slice %91 {offsets = [1, 0], sizes = [2, 32], strides = [1, 1]} : vector<4x32xf32> to vector<2x32xf32>
    %94 = vector.extract_strided_slice %91 {offsets = [2, 0], sizes = [2, 32], strides = [1, 1]} : vector<4x32xf32> to vector<2x32xf32>
    %95 = tpu.concatenate %92, %93, %94 in 1 : vector<2x32xf32>, vector<2x32xf32>, vector<2x32xf32> -> vector<2x96xf32>
    %96 = arith.truncf %95 : vector<2x96xf32> to vector<2x96xbf16>
    %c0_67 = arith.constant 0 : index
    %c0_68 = arith.constant 0 : index
    %c0_69 = arith.constant 0 : index
    %97 = vector.load %arg8[%c0_67, %c0_68, %c0_69] : memref<1x96x32xbf16, #tpu.memory_space<vmem>>, vector<1x96x32xbf16>
    %98 = vector.shape_cast %97 : vector<1x96x32xbf16> to vector<96x32xbf16>
    %cst_70 = arith.constant dense<0.000000e+00> : vector<2x32xf32>
    %99 = tpu.matmul %96, %98, %cst_70 {dimension_numbers = #tpu.dot_dimension_numbers<[1], [0], [0], [1], [0, 0, 1, 1], [], []>} : vector<2x96xbf16>, vector<96x32xbf16>, vector<2x32xf32> -> vector<2x32xf32>
    %c0_71 = arith.constant 0 : index
    %c0_72 = arith.constant 0 : index
    %c0_73 = arith.constant 0 : index
    %100 = vector.load %arg14[%c0_71, %c0_72, %c0_73] : memref<1x1x32xf32, #tpu.memory_space<vmem>>, vector<1x1x32xf32>
    %101 = vector.shape_cast %100 : vector<1x1x32xf32> to vector<1x32xf32>
    %102 = vector.broadcast %101 : vector<1x32xf32> to vector<2x32xf32>
    %103 = arith.addf %99, %102 : vector<2x32xf32>
    %cst_74 = arith.constant dense<0.000000e+00> : vector<32xf32>
    %104 = vector.multi_reduction <add>, %103, %cst_74 [0] : vector<2x32xf32> to vector<32xf32>
    %105 = vector.shape_cast %104 : vector<32xf32> to vector<1x32xf32>
    %cst_75 = arith.constant 2.000000e+00 : f32
    %106 = vector.broadcast %cst_75 : f32 to vector<1x32xf32>
    %107 = arith.divf %105, %106 : vector<1x32xf32>
    %c0_76 = arith.constant 0 : index
    %c0_77 = arith.constant 0 : index
    %c0_78 = arith.constant 0 : index
    %c0_79 = arith.constant 0 : index
    %108 = vector.load %arg15[%c0_76, %c0_77, %c0_78, %c0_79] : memref<1x1x1x32xf32, #tpu.memory_space<vmem>>, vector<1x1x1x32xf32>
    %109 = vector.shape_cast %108 : vector<1x1x1x32xf32> to vector<1x32xf32>
    %110 = vector.shape_cast %107 : vector<1x32xf32> to vector<1x1x1x32xf32>
    tpu.vector_store %arg15[%c0_76, %c0_77, %c0_78, %c0_79], %110 {strides = array<i32>} : memref<1x1x1x32xf32, #tpu.memory_space<vmem>>, vector<1x1x1x32xf32>,
    return
  }
  func.func @transform_0(%arg0: i32, %arg1: i32) -> (i32, i32, i32, i32) {
    %c0_i32 = arith.constant 0 : i32
    %c0_i32_0 = arith.constant 0 : i32
    %c0_i32_1 = arith.constant 0 : i32
    return %arg0, %arg1, %c0_i32, %c0_i32_0 : i32, i32, i32, i32
  }
  func.func @transform_1(%arg0: i32, %arg1: i32) -> (i32, i32, i32) {
    %c0_i32 = arith.constant 0 : i32
    %c0_i32_0 = arith.constant 0 : i32
    %c0_i32_1 = arith.constant 0 : i32
    return %arg0, %c0_i32, %c0_i32_0 : i32, i32, i32
  }
  func.func @transform_2(%arg0: i32, %arg1: i32) -> (i32, i32, i32) {
    %c0_i32 = arith.constant 0 : i32
    %c0_i32_0 = arith.constant 0 : i32
    %c0_i32_1 = arith.constant 0 : i32
    return %arg0, %c0_i32, %c0_i32_0 : i32, i32, i32
  }
  func.func @transform_3(%arg0: i32, %arg1: i32) -> (i32, i32, i32) {
    %c0_i32 = arith.constant 0 : i32
    %c0_i32_0 = arith.constant 0 : i32
    %c0_i32_1 = arith.constant 0 : i32
    return %arg0, %c0_i32, %c0_i32_0 : i32, i32, i32
  }
  func.func @transform_4(%arg0: i32, %arg1: i32) -> (i32, i32, i32) {
    %c0_i32 = arith.constant 0 : i32
    %c0_i32_0 = arith.constant 0 : i32
    %c0_i32_1 = arith.constant 0 : i32
    return %arg0, %c0_i32, %c0_i32_0 : i32, i32, i32
  }
  func.func @transform_5(%arg0: i32, %arg1: i32) -> (i32, i32, i32) {
    %c0_i32 = arith.constant 0 : i32
    %c0_i32_0 = arith.constant 0 : i32
    %c0_i32_1 = arith.constant 0 : i32
    return %arg0, %c0_i32, %c0_i32_0 : i32, i32, i32
  }
  func.func @transform_6(%arg0: i32, %arg1: i32) -> (i32, i32, i32) {
    %c0_i32 = arith.constant 0 : i32
    %c0_i32_0 = arith.constant 0 : i32
    %c0_i32_1 = arith.constant 0 : i32
    return %arg0, %c0_i32, %c0_i32_0 : i32, i32, i32
  }
  func.func @transform_7(%arg0: i32, %arg1: i32) -> (i32, i32, i32) {
    %c0_i32 = arith.constant 0 : i32
    %c0_i32_0 = arith.constant 0 : i32
    %c0_i32_1 = arith.constant 0 : i32
    return %arg0, %c0_i32, %c0_i32_0 : i32, i32, i32
  }
  func.func @transform_8(%arg0: i32, %arg1: i32) -> (i32, i32, i32) {
    %c0_i32 = arith.constant 0 : i32
    %c0_i32_0 = arith.constant 0 : i32
    %c0_i32_1 = arith.constant 0 : i32
    return %arg0, %c0_i32, %c0_i32_0 : i32, i32, i32
  }
  func.func @transform_9(%arg0: i32, %arg1: i32) -> (i32, i32, i32) {
    %c0_i32 = arith.constant 0 : i32
    %c0_i32_0 = arith.constant 0 : i32
    %c0_i32_1 = arith.constant 0 : i32
    return %arg0, %c0_i32, %c0_i32_0 : i32, i32, i32
  }
  func.func @transform_10(%arg0: i32, %arg1: i32) -> (i32, i32, i32) {
    %c0_i32 = arith.constant 0 : i32
    %c0_i32_0 = arith.constant 0 : i32
    %c0_i32_1 = arith.constant 0 : i32
    return %arg0, %c0_i32, %c0_i32_0 : i32, i32, i32
  }
  func.func @transform_11(%arg0: i32, %arg1: i32) -> (i32, i32, i32) {
    %c0_i32 = arith.constant 0 : i32
    %c0_i32_0 = arith.constant 0 : i32
    %c0_i32_1 = arith.constant 0 : i32
    return %arg0, %c0_i32, %c0_i32_0 : i32, i32, i32
  }
  func.func @transform_12(%arg0: i32, %arg1: i32) -> (i32, i32, i32) {
    %c0_i32 = arith.constant 0 : i32
    %c0_i32_0 = arith.constant 0 : i32
    %c0_i32_1 = arith.constant 0 : i32
    return %arg0, %c0_i32, %c0_i32_0 : i32, i32, i32
  }
  func.func @transform_13(%arg0: i32, %arg1: i32) -> (i32, i32, i32, i32) {
    %c0_i32 = arith.constant 0 : i32
    %c0_i32_0 = arith.constant 0 : i32
    %c0_i32_1 = arith.constant 0 : i32
    return %arg0, %arg1, %c0_i32, %c0_i32_0 : i32, i32, i32, i32
  }
}

module attributes {stable_mosaic.version = 11 : i64} {
  func.func @kernel(%arg0: i32, %arg1: i32, %arg2: memref<1x1x128x32xf32, #tpu.memory_space<vmem>>, %arg3: memref<1x288x32xbf16, #tpu.memory_space<vmem>>, %arg4: memref<1x96x32xbf16, #tpu.memory_space<vmem>>, %arg5: memref<1x96x32xbf16, #tpu.memory_space<vmem>>, %arg6: memref<1x288x32xbf16, #tpu.memory_space<vmem>>, %arg7: memref<1x96x32xbf16, #tpu.memory_space<vmem>>, %arg8: memref<1x96x32xbf16, #tpu.memory_space<vmem>>, %arg9: memref<1x1x32xf32, #tpu.memory_space<vmem>>, %arg10: memref<1x1x32xf32, #tpu.memory_space<vmem>>, %arg11: memref<1x1x32xf32, #tpu.memory_space<vmem>>, %arg12: memref<1x1x32xf32, #tpu.memory_space<vmem>>, %arg13: memref<1x1x32xf32, #tpu.memory_space<vmem>>, %arg14: memref<1x1x32xf32, #tpu.memory_space<vmem>>, %arg15: memref<1x1x1x32xf32, #tpu.memory_space<vmem>>, %arg16: memref<30x32xf32, #tpu.memory_space<vmem>>, %arg17: memref<30x32xf32, #tpu.memory_space<vmem>>) attributes {dimension_semantics = [#tpu.dimension_semantics<parallel>, #tpu.dimension_semantics<parallel>], iteration_bounds = array<i64: 1, 1>, scalar_prefetch = 0 : i64, scratch_operands = 2 : i64, tpu.core_type = #tpu.core_type<tc>, window_params = [{transform_indices = @transform_0, window_bounds = array<i64: 1, 1, 128, 32>}, {transform_indices = @transform_1, window_bounds = array<i64: 1, 288, 32>}, {transform_indices = @transform_2, window_bounds = array<i64: 1, 96, 32>}, {transform_indices = @transform_3, window_bounds = array<i64: 1, 96, 32>}, {transform_indices = @transform_4, window_bounds = array<i64: 1, 288, 32>}, {transform_indices = @transform_5, window_bounds = array<i64: 1, 96, 32>}, {transform_indices = @transform_6, window_bounds = array<i64: 1, 96, 32>}, {transform_indices = @transform_7, window_bounds = array<i64: 1, 1, 32>}, {transform_indices = @transform_8, window_bounds = array<i64: 1, 1, 32>}, {transform_indices = @transform_9, window_bounds = array<i64: 1, 1, 32>}, {transform_indices = @transform_10, window_bounds = array<i64: 1, 1, 32>}, {transform_indices = @transform_11, window_bounds = array<i64: 1, 1, 32>}, {transform_indices = @transform_12, window_bounds = array<i64: 1, 1, 32>}, {transform_indices = @transform_13, window_bounds = array<i64: 1, 1, 1, 32>}]} {
    %c0 = arith.constant 0 : index
    %c0_0 = arith.constant 0 : index
    %c0_1 = arith.constant 0 : index
    %c0_2 = arith.constant 0 : index
    %0 = tpu.strided_load %arg2[%c0, %c0_0, %c0_1, %c0_2] {strides = array<i32: 1, 1, 4, 1>} : memref<1x1x128x32xf32, #tpu.memory_space<vmem>>, vector<1x1x32x32xf32>
    %1 = vector.shape_cast %0 : vector<1x1x32x32xf32> to vector<32x32xf32>
    %cst = arith.constant 0.000000e+00 : f32
    %2 = vector.broadcast %cst : f32 to vector<32x32xf32>
    %3 = arith.maximumf %1, %2 : vector<32x32xf32>
    %c0_3 = arith.constant 0 : index
    %c0_4 = arith.constant 0 : index
    %c1 = arith.constant 1 : index
    %c0_5 = arith.constant 0 : index
    %4 = tpu.strided_load %arg2[%c0_3, %c0_4, %c1, %c0_5] {strides = array<i32: 1, 1, 4, 1>} : memref<1x1x128x32xf32, #tpu.memory_space<vmem>>, vector<1x1x31x32xf32>
    %5 = vector.shape_cast %4 : vector<1x1x31x32xf32> to vector<31x32xf32>
    %cst_6 = arith.constant 0.000000e+00 : f32
    %6 = vector.broadcast %cst_6 : f32 to vector<31x32xf32>
    %7 = arith.maximumf %5, %6 : vector<31x32xf32>
    %c0_7 = arith.constant 0 : index
    %c0_8 = arith.constant 0 : index
    %c2 = arith.constant 2 : index
    %c0_9 = arith.constant 0 : index
    %8 = tpu.strided_load %arg2[%c0_7, %c0_8, %c2, %c0_9] {strides = array<i32: 1, 1, 4, 1>} : memref<1x1x128x32xf32, #tpu.memory_space<vmem>>, vector<1x1x31x32xf32>
    %9 = vector.shape_cast %8 : vector<1x1x31x32xf32> to vector<31x32xf32>
    %cst_10 = arith.constant 0.000000e+00 : f32
    %10 = vector.broadcast %cst_10 : f32 to vector<31x32xf32>
    %11 = arith.maximumf %9, %10 : vector<31x32xf32>
    %c0_11 = arith.constant 0 : index
    %c0_12 = arith.constant 0 : index
    %c3 = arith.constant 3 : index
    %c0_13 = arith.constant 0 : index
    %12 = tpu.strided_load %arg2[%c0_11, %c0_12, %c3, %c0_13] {strides = array<i32: 1, 1, 4, 1>} : memref<1x1x128x32xf32, #tpu.memory_space<vmem>>, vector<1x1x31x32xf32>
    %13 = vector.shape_cast %12 : vector<1x1x31x32xf32> to vector<31x32xf32>
    %cst_14 = arith.constant 0.000000e+00 : f32
    %14 = vector.broadcast %cst_14 : f32 to vector<31x32xf32>
    %15 = arith.maximumf %13, %14 : vector<31x32xf32>
    %16 = vector.extract_strided_slice %3 {offsets = [0, 0], sizes = [30, 32], strides = [1, 1]} : vector<32x32xf32> to vector<30x32xf32>
    %17 = vector.extract_strided_slice %7 {offsets = [0, 0], sizes = [30, 32], strides = [1, 1]} : vector<31x32xf32> to vector<30x32xf32>
    %18 = vector.extract_strided_slice %11 {offsets = [0, 0], sizes = [30, 32], strides = [1, 1]} : vector<31x32xf32> to vector<30x32xf32>
    %19 = vector.extract_strided_slice %15 {offsets = [0, 0], sizes = [30, 32], strides = [1, 1]} : vector<31x32xf32> to vector<30x32xf32>
    %20 = vector.extract_strided_slice %3 {offsets = [1, 0], sizes = [30, 32], strides = [1, 1]} : vector<32x32xf32> to vector<30x32xf32>
    %21 = vector.extract_strided_slice %7 {offsets = [1, 0], sizes = [30, 32], strides = [1, 1]} : vector<31x32xf32> to vector<30x32xf32>
    %22 = vector.extract_strided_slice %11 {offsets = [1, 0], sizes = [30, 32], strides = [1, 1]} : vector<31x32xf32> to vector<30x32xf32>
    %23 = vector.extract_strided_slice %15 {offsets = [1, 0], sizes = [30, 32], strides = [1, 1]} : vector<31x32xf32> to vector<30x32xf32>
    %24 = vector.extract_strided_slice %3 {offsets = [2, 0], sizes = [30, 32], strides = [1, 1]} : vector<32x32xf32> to vector<30x32xf32>
    %25 = tpu.concatenate %16, %17, %18, %19, %20, %21, %22, %23, %24 in 1 : vector<30x32xf32>, vector<30x32xf32>, vector<30x32xf32>, vector<30x32xf32>, vector<30x32xf32>, vector<30x32xf32>, vector<30x32xf32>, vector<30x32xf32>, vector<30x32xf32> -> vector<30x288xf32>
    %26 = arith.truncf %25 : vector<30x288xf32> to vector<30x288xbf16>
    %c0_15 = arith.constant 0 : index
    %c0_16 = arith.constant 0 : index
    %c0_17 = arith.constant 0 : index
    %27 = vector.load %arg3[%c0_15, %c0_16, %c0_17] : memref<1x288x32xbf16, #tpu.memory_space<vmem>>, vector<1x288x32xbf16>
    %28 = vector.shape_cast %27 : vector<1x288x32xbf16> to vector<288x32xbf16>
    %cst_18 = arith.constant dense<0.000000e+00> : vector<30x32xf32>
    %29 = tpu.matmul %26, %28, %cst_18 {dimension_numbers = #tpu.dot_dimension_numbers<[1], [0], [0], [1], [0, 0, 1, 1], [], []>} : vector<30x288xbf16>, vector<288x32xbf16>, vector<30x32xf32> -> vector<30x32xf32>
    %c0_19 = arith.constant 0 : index
    %c0_20 = arith.constant 0 : index
    %c0_21 = arith.constant 0 : index
    %30 = vector.load %arg9[%c0_19, %c0_20, %c0_21] : memref<1x1x32xf32, #tpu.memory_space<vmem>>, vector<1x1x32xf32>
    %31 = vector.shape_cast %30 : vector<1x1x32xf32> to vector<1x32xf32>
    %32 = vector.broadcast %31 : vector<1x32xf32> to vector<30x32xf32>
    %33 = arith.addf %29, %32 : vector<30x32xf32>
    %cst_22 = arith.constant 0.000000e+00 : f32
    %34 = vector.broadcast %cst_22 : f32 to vector<30x32xf32>
    %35 = arith.maximumf %33, %34 : vector<30x32xf32>
    %c0_23 = arith.constant 0 : index
    %c0_24 = arith.constant 0 : index
    %36 = vector.load %arg17[%c0_23, %c0_24] : memref<30x32xf32, #tpu.memory_space<vmem>>, vector<30x32xf32>
    tpu.vector_store %arg17[%c0_23, %c0_24], %35 {strides = array<i32>} : memref<30x32xf32, #tpu.memory_space<vmem>>, vector<30x32xf32>,
    %c0_25 = arith.constant 0 : index
    %c0_26 = arith.constant 0 : index
    %37 = vector.load %arg17[%c0_25, %c0_26] : memref<30x32xf32, #tpu.memory_space<vmem>>, vector<30x32xf32>
    %38 = vector.extract_strided_slice %37 {offsets = [0, 0], sizes = [28, 32], strides = [1, 1]} : vector<30x32xf32> to vector<28x32xf32>
    %39 = vector.extract_strided_slice %37 {offsets = [1, 0], sizes = [28, 32], strides = [1, 1]} : vector<30x32xf32> to vector<28x32xf32>
    %40 = vector.extract_strided_slice %37 {offsets = [2, 0], sizes = [28, 32], strides = [1, 1]} : vector<30x32xf32> to vector<28x32xf32>
    %41 = tpu.concatenate %38, %39, %40 in 1 : vector<28x32xf32>, vector<28x32xf32>, vector<28x32xf32> -> vector<28x96xf32>
    %42 = arith.truncf %41 : vector<28x96xf32> to vector<28x96xbf16>
    %c0_27 = arith.constant 0 : index
    %c0_28 = arith.constant 0 : index
    %c0_29 = arith.constant 0 : index
    %43 = vector.load %arg4[%c0_27, %c0_28, %c0_29] : memref<1x96x32xbf16, #tpu.memory_space<vmem>>, vector<1x96x32xbf16>
    %44 = vector.shape_cast %43 : vector<1x96x32xbf16> to vector<96x32xbf16>
    %cst_30 = arith.constant dense<0.000000e+00> : vector<28x32xf32>
    %45 = tpu.matmul %42, %44, %cst_30 {dimension_numbers = #tpu.dot_dimension_numbers<[1], [0], [0], [1], [0, 0, 1, 1], [], []>} : vector<28x96xbf16>, vector<96x32xbf16>, vector<28x32xf32> -> vector<28x32xf32>
    %c0_31 = arith.constant 0 : index
    %c0_32 = arith.constant 0 : index
    %c0_33 = arith.constant 0 : index
    %46 = vector.load %arg10[%c0_31, %c0_32, %c0_33] : memref<1x1x32xf32, #tpu.memory_space<vmem>>, vector<1x1x32xf32>
    %47 = vector.shape_cast %46 : vector<1x1x32xf32> to vector<1x32xf32>
    %48 = vector.broadcast %47 : vector<1x32xf32> to vector<28x32xf32>
    %49 = arith.addf %45, %48 : vector<28x32xf32>
    %cst_34 = arith.constant 0.000000e+00 : f32
    %50 = vector.broadcast %cst_34 : f32 to vector<28x32xf32>
    %51 = arith.maximumf %49, %50 : vector<28x32xf32>
    %c0_35 = arith.constant 0 : index
    %c0_36 = arith.constant 0 : index
    %52 = vector.load %arg16[%c0_35, %c0_36] : memref<30x32xf32, #tpu.memory_space<vmem>>, vector<28x32xf32>
    tpu.vector_store %arg16[%c0_35, %c0_36], %51 {strides = array<i32>} : memref<30x32xf32, #tpu.memory_space<vmem>>, vector<28x32xf32>,
    %c0_37 = arith.constant 0 : index
    %c0_38 = arith.constant 0 : index
    %53 = vector.load %arg16[%c0_37, %c0_38] : memref<30x32xf32, #tpu.memory_space<vmem>>, vector<28x32xf32>
    %54 = vector.extract_strided_slice %53 {offsets = [0, 0], sizes = [26, 32], strides = [1, 1]} : vector<28x32xf32> to vector<26x32xf32>
    %55 = vector.extract_strided_slice %53 {offsets = [1, 0], sizes = [26, 32], strides = [1, 1]} : vector<28x32xf32> to vector<26x32xf32>
    %56 = vector.extract_strided_slice %53 {offsets = [2, 0], sizes = [26, 32], strides = [1, 1]} : vector<28x32xf32> to vector<26x32xf32>
    %57 = tpu.concatenate %54, %55, %56 in 1 : vector<26x32xf32>, vector<26x32xf32>, vector<26x32xf32> -> vector<26x96xf32>
    %58 = arith.truncf %57 : vector<26x96xf32> to vector<26x96xbf16>
    %c0_39 = arith.constant 0 : index
    %c0_40 = arith.constant 0 : index
    %c0_41 = arith.constant 0 : index
    %59 = vector.load %arg5[%c0_39, %c0_40, %c0_41] : memref<1x96x32xbf16, #tpu.memory_space<vmem>>, vector<1x96x32xbf16>
    %60 = vector.shape_cast %59 : vector<1x96x32xbf16> to vector<96x32xbf16>
    %cst_42 = arith.constant dense<0.000000e+00> : vector<26x32xf32>
    %61 = tpu.matmul %58, %60, %cst_42 {dimension_numbers = #tpu.dot_dimension_numbers<[1], [0], [0], [1], [0, 0, 1, 1], [], []>} : vector<26x96xbf16>, vector<96x32xbf16>, vector<26x32xf32> -> vector<26x32xf32>
    %c0_43 = arith.constant 0 : index
    %c0_44 = arith.constant 0 : index
    %c0_45 = arith.constant 0 : index
    %62 = vector.load %arg11[%c0_43, %c0_44, %c0_45] : memref<1x1x32xf32, #tpu.memory_space<vmem>>, vector<1x1x32xf32>
    %63 = vector.shape_cast %62 : vector<1x1x32xf32> to vector<1x32xf32>
    %64 = vector.broadcast %63 : vector<1x32xf32> to vector<26x32xf32>
    %65 = arith.addf %61, %64 : vector<26x32xf32>
    %cst_46 = arith.constant 0.000000e+00 : f32
    %66 = vector.broadcast %cst_46 : f32 to vector<26x32xf32>
    %67 = arith.maximumf %65, %66 : vector<26x32xf32>
    %c0_47 = arith.constant 0 : index
    %c0_48 = arith.constant 0 : index
    %68 = vector.load %arg17[%c0_47, %c0_48] : memref<30x32xf32, #tpu.memory_space<vmem>>, vector<26x32xf32>
    tpu.vector_store %arg17[%c0_47, %c0_48], %67 {strides = array<i32>} : memref<30x32xf32, #tpu.memory_space<vmem>>, vector<26x32xf32>,
    %c0_49 = arith.constant 0 : index
    %c0_50 = arith.constant 0 : index
    %69 = tpu.strided_load %arg17[%c0_49, %c0_50] {strides = array<i32: 4, 1>} : memref<30x32xf32, #tpu.memory_space<vmem>>, vector<7x32xf32>
    %c1_51 = arith.constant 1 : index
    %c0_52 = arith.constant 0 : index
    %70 = tpu.strided_load %arg17[%c1_51, %c0_52] {strides = array<i32: 4, 1>} : memref<30x32xf32, #tpu.memory_space<vmem>>, vector<6x32xf32>
    %c2_53 = arith.constant 2 : index
    %c0_54 = arith.constant 0 : index
    %71 = tpu.strided_load %arg17[%c2_53, %c0_54] {strides = array<i32: 4, 1>} : memref<30x32xf32, #tpu.memory_space<vmem>>, vector<6x32xf32>
    %c3_55 = arith.constant 3 : index
    %c0_56 = arith.constant 0 : index
    %72 = tpu.strided_load %arg17[%c3_55, %c0_56] {strides = array<i32: 4, 1>} : memref<30x32xf32, #tpu.memory_space<vmem>>, vector<6x32xf32>
    %73 = vector.extract_strided_slice %69 {offsets = [0, 0], sizes = [5, 32], strides = [1, 1]} : vector<7x32xf32> to vector<5x32xf32>
    %74 = vector.extract_strided_slice %70 {offsets = [0, 0], sizes = [5, 32], strides = [1, 1]} : vector<6x32xf32> to vector<5x32xf32>
    %75 = vector.extract_strided_slice %71 {offsets = [0, 0], sizes = [5, 32], strides = [1, 1]} : vector<6x32xf32> to vector<5x32xf32>
    %76 = vector.extract_strided_slice %72 {offsets = [0, 0], sizes = [5, 32], strides = [1, 1]} : vector<6x32xf32> to vector<5x32xf32>
    %77 = vector.extract_strided_slice %69 {offsets = [1, 0], sizes = [5, 32], strides = [1, 1]} : vector<7x32xf32> to vector<5x32xf32>
    %78 = vector.extract_strided_slice %70 {offsets = [1, 0], sizes = [5, 32], strides = [1, 1]} : vector<6x32xf32> to vector<5x32xf32>
    %79 = vector.extract_strided_slice %71 {offsets = [1, 0], sizes = [5, 32], strides = [1, 1]} : vector<6x32xf32> to vector<5x32xf32>
    %80 = vector.extract_strided_slice %72 {offsets = [1, 0], sizes = [5, 32], strides = [1, 1]} : vector<6x32xf32> to vector<5x32xf32>
    %81 = vector.extract_strided_slice %69 {offsets = [2, 0], sizes = [5, 32], strides = [1, 1]} : vector<7x32xf32> to vector<5x32xf32>
    %82 = tpu.concatenate %73, %74, %75, %76, %77, %78, %79, %80, %81 in 1 : vector<5x32xf32>, vector<5x32xf32>, vector<5x32xf32>, vector<5x32xf32>, vector<5x32xf32>, vector<5x32xf32>, vector<5x32xf32>, vector<5x32xf32>, vector<5x32xf32> -> vector<5x288xf32>
    %83 = arith.truncf %82 : vector<5x288xf32> to vector<5x288xbf16>
    %c0_57 = arith.constant 0 : index
    %c0_58 = arith.constant 0 : index
    %c0_59 = arith.constant 0 : index
    %84 = vector.load %arg6[%c0_57, %c0_58, %c0_59] : memref<1x288x32xbf16, #tpu.memory_space<vmem>>, vector<1x288x32xbf16>
    %85 = vector.shape_cast %84 : vector<1x288x32xbf16> to vector<288x32xbf16>
    %cst_60 = arith.constant dense<0.000000e+00> : vector<5x32xf32>
    %86 = tpu.matmul %83, %85, %cst_60 {dimension_numbers = #tpu.dot_dimension_numbers<[1], [0], [0], [1], [0, 0, 1, 1], [], []>} : vector<5x288xbf16>, vector<288x32xbf16>, vector<5x32xf32> -> vector<5x32xf32>
    %c0_61 = arith.constant 0 : index
    %c0_62 = arith.constant 0 : index
    %c0_63 = arith.constant 0 : index
    %87 = vector.load %arg12[%c0_61, %c0_62, %c0_63] : memref<1x1x32xf32, #tpu.memory_space<vmem>>, vector<1x1x32xf32>
    %88 = vector.shape_cast %87 : vector<1x1x32xf32> to vector<1x32xf32>
    %89 = vector.broadcast %88 : vector<1x32xf32> to vector<5x32xf32>
    %90 = arith.addf %86, %89 : vector<5x32xf32>
    %cst_64 = arith.constant 0.000000e+00 : f32
    %91 = vector.broadcast %cst_64 : f32 to vector<5x32xf32>
    %92 = arith.maximumf %90, %91 : vector<5x32xf32>
    %c0_65 = arith.constant 0 : index
    %c0_66 = arith.constant 0 : index
    %93 = vector.load %arg16[%c0_65, %c0_66] : memref<30x32xf32, #tpu.memory_space<vmem>>, vector<5x32xf32>
    tpu.vector_store %arg16[%c0_65, %c0_66], %92 {strides = array<i32>} : memref<30x32xf32, #tpu.memory_space<vmem>>, vector<5x32xf32>,
    %c0_67 = arith.constant 0 : index
    %c0_68 = arith.constant 0 : index
    %94 = vector.load %arg16[%c0_67, %c0_68] : memref<30x32xf32, #tpu.memory_space<vmem>>, vector<5x32xf32>
    %95 = vector.extract_strided_slice %94 {offsets = [0, 0], sizes = [3, 32], strides = [1, 1]} : vector<5x32xf32> to vector<3x32xf32>
    %96 = vector.extract_strided_slice %94 {offsets = [1, 0], sizes = [3, 32], strides = [1, 1]} : vector<5x32xf32> to vector<3x32xf32>
    %97 = vector.extract_strided_slice %94 {offsets = [2, 0], sizes = [3, 32], strides = [1, 1]} : vector<5x32xf32> to vector<3x32xf32>
    %98 = tpu.concatenate %95, %96, %97 in 1 : vector<3x32xf32>, vector<3x32xf32>, vector<3x32xf32> -> vector<3x96xf32>
    %99 = arith.truncf %98 : vector<3x96xf32> to vector<3x96xbf16>
    %c0_69 = arith.constant 0 : index
    %c0_70 = arith.constant 0 : index
    %c0_71 = arith.constant 0 : index
    %100 = vector.load %arg7[%c0_69, %c0_70, %c0_71] : memref<1x96x32xbf16, #tpu.memory_space<vmem>>, vector<1x96x32xbf16>
    %101 = vector.shape_cast %100 : vector<1x96x32xbf16> to vector<96x32xbf16>
    %cst_72 = arith.constant dense<0.000000e+00> : vector<3x32xf32>
    %102 = tpu.matmul %99, %101, %cst_72 {dimension_numbers = #tpu.dot_dimension_numbers<[1], [0], [0], [1], [0, 0, 1, 1], [], []>} : vector<3x96xbf16>, vector<96x32xbf16>, vector<3x32xf32> -> vector<3x32xf32>
    %c0_73 = arith.constant 0 : index
    %c0_74 = arith.constant 0 : index
    %c0_75 = arith.constant 0 : index
    %103 = vector.load %arg13[%c0_73, %c0_74, %c0_75] : memref<1x1x32xf32, #tpu.memory_space<vmem>>, vector<1x1x32xf32>
    %104 = vector.shape_cast %103 : vector<1x1x32xf32> to vector<1x32xf32>
    %105 = vector.broadcast %104 : vector<1x32xf32> to vector<3x32xf32>
    %106 = arith.addf %102, %105 : vector<3x32xf32>
    %cst_76 = arith.constant 0.000000e+00 : f32
    %107 = vector.broadcast %cst_76 : f32 to vector<3x32xf32>
    %108 = arith.maximumf %106, %107 : vector<3x32xf32>
    %c0_77 = arith.constant 0 : index
    %c0_78 = arith.constant 0 : index
    %109 = vector.load %arg17[%c0_77, %c0_78] : memref<30x32xf32, #tpu.memory_space<vmem>>, vector<3x32xf32>
    tpu.vector_store %arg17[%c0_77, %c0_78], %108 {strides = array<i32>} : memref<30x32xf32, #tpu.memory_space<vmem>>, vector<3x32xf32>,
    %c0_79 = arith.constant 0 : index
    %c0_80 = arith.constant 0 : index
    %110 = vector.load %arg17[%c0_79, %c0_80] : memref<30x32xf32, #tpu.memory_space<vmem>>, vector<3x32xf32>
    %111 = vector.extract_strided_slice %110 {offsets = [0, 0], sizes = [1, 32], strides = [1, 1]} : vector<3x32xf32> to vector<1x32xf32>
    %112 = vector.extract_strided_slice %110 {offsets = [1, 0], sizes = [1, 32], strides = [1, 1]} : vector<3x32xf32> to vector<1x32xf32>
    %113 = vector.extract_strided_slice %110 {offsets = [2, 0], sizes = [1, 32], strides = [1, 1]} : vector<3x32xf32> to vector<1x32xf32>
    %114 = tpu.concatenate %111, %112, %113 in 1 : vector<1x32xf32>, vector<1x32xf32>, vector<1x32xf32> -> vector<1x96xf32>
    %115 = arith.truncf %114 : vector<1x96xf32> to vector<1x96xbf16>
    %c0_81 = arith.constant 0 : index
    %c0_82 = arith.constant 0 : index
    %c0_83 = arith.constant 0 : index
    %116 = vector.load %arg8[%c0_81, %c0_82, %c0_83] : memref<1x96x32xbf16, #tpu.memory_space<vmem>>, vector<1x96x32xbf16>
    %117 = vector.shape_cast %116 : vector<1x96x32xbf16> to vector<96x32xbf16>
    %cst_84 = arith.constant dense<0.000000e+00> : vector<1x32xf32>
    %118 = tpu.matmul %115, %117, %cst_84 {dimension_numbers = #tpu.dot_dimension_numbers<[1], [0], [0], [1], [0, 0, 1, 1], [], []>} : vector<1x96xbf16>, vector<96x32xbf16>, vector<1x32xf32> -> vector<1x32xf32>
    %c0_85 = arith.constant 0 : index
    %c0_86 = arith.constant 0 : index
    %c0_87 = arith.constant 0 : index
    %119 = vector.load %arg14[%c0_85, %c0_86, %c0_87] : memref<1x1x32xf32, #tpu.memory_space<vmem>>, vector<1x1x32xf32>
    %120 = vector.shape_cast %119 : vector<1x1x32xf32> to vector<1x32xf32>
    %121 = arith.addf %118, %120 : vector<1x32xf32>
    %cst_88 = arith.constant dense<0.000000e+00> : vector<32xf32>
    %122 = vector.multi_reduction <add>, %121, %cst_88 [0] : vector<1x32xf32> to vector<32xf32>
    %123 = vector.shape_cast %122 : vector<32xf32> to vector<1x32xf32>
    %cst_89 = arith.constant 1.000000e+00 : f32
    %124 = vector.broadcast %cst_89 : f32 to vector<1x32xf32>
    %125 = arith.divf %123, %124 : vector<1x32xf32>
    %c0_90 = arith.constant 0 : index
    %c0_91 = arith.constant 0 : index
    %c0_92 = arith.constant 0 : index
    %c0_93 = arith.constant 0 : index
    %126 = vector.load %arg15[%c0_90, %c0_91, %c0_92, %c0_93] : memref<1x1x1x32xf32, #tpu.memory_space<vmem>>, vector<1x1x1x32xf32>
    %127 = vector.shape_cast %126 : vector<1x1x1x32xf32> to vector<1x32xf32>
    %128 = vector.shape_cast %125 : vector<1x32xf32> to vector<1x1x1x32xf32>
    tpu.vector_store %arg15[%c0_90, %c0_91, %c0_92, %c0_93], %128 {strides = array<i32>} : memref<1x1x1x32xf32, #tpu.memory_space<vmem>>, vector<1x1x1x32xf32>,
    return
  }
  func.func @transform_0(%arg0: i32, %arg1: i32) -> (i32, i32, i32, i32) {
    %c0_i32 = arith.constant 0 : i32
    %c0_i32_0 = arith.constant 0 : i32
    %c0_i32_1 = arith.constant 0 : i32
    return %arg0, %arg1, %c0_i32, %c0_i32_0 : i32, i32, i32, i32
  }
  func.func @transform_1(%arg0: i32, %arg1: i32) -> (i32, i32, i32) {
    %c0_i32 = arith.constant 0 : i32
    %c0_i32_0 = arith.constant 0 : i32
    %c0_i32_1 = arith.constant 0 : i32
    return %arg0, %c0_i32, %c0_i32_0 : i32, i32, i32
  }
  func.func @transform_2(%arg0: i32, %arg1: i32) -> (i32, i32, i32) {
    %c0_i32 = arith.constant 0 : i32
    %c0_i32_0 = arith.constant 0 : i32
    %c0_i32_1 = arith.constant 0 : i32
    return %arg0, %c0_i32, %c0_i32_0 : i32, i32, i32
  }
  func.func @transform_3(%arg0: i32, %arg1: i32) -> (i32, i32, i32) {
    %c0_i32 = arith.constant 0 : i32
    %c0_i32_0 = arith.constant 0 : i32
    %c0_i32_1 = arith.constant 0 : i32
    return %arg0, %c0_i32, %c0_i32_0 : i32, i32, i32
  }
  func.func @transform_4(%arg0: i32, %arg1: i32) -> (i32, i32, i32) {
    %c0_i32 = arith.constant 0 : i32
    %c0_i32_0 = arith.constant 0 : i32
    %c0_i32_1 = arith.constant 0 : i32
    return %arg0, %c0_i32, %c0_i32_0 : i32, i32, i32
  }
  func.func @transform_5(%arg0: i32, %arg1: i32) -> (i32, i32, i32) {
    %c0_i32 = arith.constant 0 : i32
    %c0_i32_0 = arith.constant 0 : i32
    %c0_i32_1 = arith.constant 0 : i32
    return %arg0, %c0_i32, %c0_i32_0 : i32, i32, i32
  }
  func.func @transform_6(%arg0: i32, %arg1: i32) -> (i32, i32, i32) {
    %c0_i32 = arith.constant 0 : i32
    %c0_i32_0 = arith.constant 0 : i32
    %c0_i32_1 = arith.constant 0 : i32
    return %arg0, %c0_i32, %c0_i32_0 : i32, i32, i32
  }
  func.func @transform_7(%arg0: i32, %arg1: i32) -> (i32, i32, i32) {
    %c0_i32 = arith.constant 0 : i32
    %c0_i32_0 = arith.constant 0 : i32
    %c0_i32_1 = arith.constant 0 : i32
    return %arg0, %c0_i32, %c0_i32_0 : i32, i32, i32
  }
  func.func @transform_8(%arg0: i32, %arg1: i32) -> (i32, i32, i32) {
    %c0_i32 = arith.constant 0 : i32
    %c0_i32_0 = arith.constant 0 : i32
    %c0_i32_1 = arith.constant 0 : i32
    return %arg0, %c0_i32, %c0_i32_0 : i32, i32, i32
  }
  func.func @transform_9(%arg0: i32, %arg1: i32) -> (i32, i32, i32) {
    %c0_i32 = arith.constant 0 : i32
    %c0_i32_0 = arith.constant 0 : i32
    %c0_i32_1 = arith.constant 0 : i32
    return %arg0, %c0_i32, %c0_i32_0 : i32, i32, i32
  }
  func.func @transform_10(%arg0: i32, %arg1: i32) -> (i32, i32, i32) {
    %c0_i32 = arith.constant 0 : i32
    %c0_i32_0 = arith.constant 0 : i32
    %c0_i32_1 = arith.constant 0 : i32
    return %arg0, %c0_i32, %c0_i32_0 : i32, i32, i32
  }
  func.func @transform_11(%arg0: i32, %arg1: i32) -> (i32, i32, i32) {
    %c0_i32 = arith.constant 0 : i32
    %c0_i32_0 = arith.constant 0 : i32
    %c0_i32_1 = arith.constant 0 : i32
    return %arg0, %c0_i32, %c0_i32_0 : i32, i32, i32
  }
  func.func @transform_12(%arg0: i32, %arg1: i32) -> (i32, i32, i32) {
    %c0_i32 = arith.constant 0 : i32
    %c0_i32_0 = arith.constant 0 : i32
    %c0_i32_1 = arith.constant 0 : i32
    return %arg0, %c0_i32, %c0_i32_0 : i32, i32, i32
  }
  func.func @transform_13(%arg0: i32, %arg1: i32) -> (i32, i32, i32, i32) {
    %c0_i32 = arith.constant 0 : i32
    %c0_i32_0 = arith.constant 0 : i32
    %c0_i32_1 = arith.constant 0 : i32
    return %arg0, %arg1, %c0_i32, %c0_i32_0 : i32, i32, i32, i32
  }
}

module attributes {stable_mosaic.version = 11 : i64} {
  func.func @_head_kernel(%arg0: memref<2x48xf32, #tpu.memory_space<vmem>>, %arg1: memref<48x128xf32, #tpu.memory_space<vmem>>, %arg2: memref<1x128xf32, #tpu.memory_space<vmem>>, %arg3: memref<128x128xf32, #tpu.memory_space<vmem>>, %arg4: memref<1x128xf32, #tpu.memory_space<vmem>>, %arg5: memref<2x128xf32, #tpu.memory_space<vmem>>) attributes {dimension_semantics = [], scalar_prefetch = 0 : i64, scratch_operands = 0 : i64, tpu.core_type = #tpu.core_type<tc>} {
    %c0 = arith.constant 0 : index
    %c0_0 = arith.constant 0 : index
    %0 = vector.load %arg0[%c0, %c0_0] : memref<2x48xf32, #tpu.memory_space<vmem>>, vector<2x48xf32>
    %c0_1 = arith.constant 0 : index
    %c0_2 = arith.constant 0 : index
    %1 = vector.load %arg1[%c0_1, %c0_2] : memref<48x128xf32, #tpu.memory_space<vmem>>, vector<48x128xf32>
    %cst = arith.constant dense<0.000000e+00> : vector<2x128xf32>
    %2 = tpu.matmul %0, %1, %cst {dimension_numbers = #tpu.dot_dimension_numbers<[1], [0], [0], [1], [0, 0, 1, 1], [], []>} : vector<2x48xf32>, vector<48x128xf32>, vector<2x128xf32> -> vector<2x128xf32>
    %c0_3 = arith.constant 0 : index
    %c0_4 = arith.constant 0 : index
    %3 = vector.load %arg2[%c0_3, %c0_4] : memref<1x128xf32, #tpu.memory_space<vmem>>, vector<1x128xf32>
    %4 = vector.broadcast %3 : vector<1x128xf32> to vector<2x128xf32>
    %5 = arith.addf %2, %4 : vector<2x128xf32>
    %cst_5 = arith.constant 0.000000e+00 : f32
    %6 = vector.broadcast %cst_5 : f32 to vector<2x128xf32>
    %7 = arith.maximumf %5, %6 : vector<2x128xf32>
    %c0_6 = arith.constant 0 : index
    %c0_7 = arith.constant 0 : index
    %8 = vector.load %arg3[%c0_6, %c0_7] : memref<128x128xf32, #tpu.memory_space<vmem>>, vector<128x128xf32>
    %cst_8 = arith.constant dense<0.000000e+00> : vector<2x128xf32>
    %9 = tpu.matmul %7, %8, %cst_8 {dimension_numbers = #tpu.dot_dimension_numbers<[1], [0], [0], [1], [0, 0, 1, 1], [], []>} : vector<2x128xf32>, vector<128x128xf32>, vector<2x128xf32> -> vector<2x128xf32>
    %c0_9 = arith.constant 0 : index
    %c0_10 = arith.constant 0 : index
    %10 = vector.load %arg4[%c0_9, %c0_10] : memref<1x128xf32, #tpu.memory_space<vmem>>, vector<1x128xf32>
    %11 = vector.broadcast %10 : vector<1x128xf32> to vector<2x128xf32>
    %12 = arith.addf %9, %11 : vector<2x128xf32>
    %cst_11 = arith.constant dense<0xFF800000> : vector<2xf32>
    %13 = vector.multi_reduction <maximumf>, %12, %cst_11 [1] : vector<2x128xf32> to vector<2xf32>
    %14 = vector.shape_cast %13 : vector<2xf32> to vector<2x1xf32>
    %15 = vector.broadcast %14 : vector<2x1xf32> to vector<2x128xf32>
    %16 = arith.subf %12, %15 : vector<2x128xf32>
    %17 = math.exp %16 : vector<2x128xf32>
    %cst_12 = arith.constant dense<0.000000e+00> : vector<2xf32>
    %18 = vector.multi_reduction <add>, %17, %cst_12 [1] : vector<2x128xf32> to vector<2xf32>
    %19 = vector.shape_cast %18 : vector<2xf32> to vector<2x1xf32>
    %20 = vector.broadcast %19 : vector<2x1xf32> to vector<2x128xf32>
    %21 = arith.divf %17, %20 : vector<2x128xf32>
    %c0_13 = arith.constant 0 : index
    %c0_14 = arith.constant 0 : index
    %22 = vector.load %arg5[%c0_13, %c0_14] : memref<2x128xf32, #tpu.memory_space<vmem>>, vector<2x128xf32>
    tpu.vector_store %arg5[%c0_13, %c0_14], %21 {strides = array<i32>} : memref<2x128xf32, #tpu.memory_space<vmem>>, vector<2x128xf32>,
    return
  }
}

</mosaic_0001>

<bundles_post_ra>
// kernel: tile.129
= control target key start
LH: loop header
LB: loop body
LE: loop exit
PB: predicated region body
PF: predicated region fallthrough
CT: control target
= control target key end

     0   :  { %s22_s0 = inlined_call_operand.vmem [shape: f32[16], index: 0, kind: input, shape index: {}]   ;;  %s23_s1 = inlined_call_operand.vmem [shape: f32[2,16], index: 1, kind: output, shape index: {}]  }
   0x1   :  { %v4_v0 = vld [vmem:[%s22_s0] ss:$0 sm:$0xff] }
   0x2   :  { %5 = vst [vmem:[%s23_s1] sm:$0x3] %v4_v0 }

// kernel: tile.174
= control target key start
LH: loop header
LB: loop body
LE: loop exit
PB: predicated region body
PF: predicated region fallthrough
CT: control target
= control target key end

     0   :  { %vm7_vm0 = vcmask 130048   ;;  %vm13_vm1 = vcmask 261248   ;;  %s39_s0 = inlined_call_operand.vmem [shape: f32[2,16], index: 0, kind: input, shape index: {}]   ;;  %s40_s1 = inlined_call_operand.vmem [shape: f32[1,1,32], index: 1, kind: output, shape index: {}]  }
   0x1   :  { %v4_v0 = vld [vmem:[%s39_s0] sm:$0x3]  ;;  %s22_s0 = smov 16  }
   0x2   :  { %5 = vst [vmem:[#allocation1] sm:$0x3] %v4_v0 }
   0x9   :  { %v10_v1 = vld [vmem:[#allocation1 + $0x1] sm:$0x1]   ;;  %v6_v2 = vld [vmem:[#allocation1] sm:$0x1]  }
   0xa   :  { %11 = vrot.lane.b32.xlu0 %v10_v1, %s22_s0  ;;  %8 = vst.msk [vmem:[#allocation0] sm:$0x1] %vm7_vm0, %v6_v2  }
  0x7c   :  { %v12_v3 = vpop.permute.xlu0 %11  }
  0x7d   :  { %14 = vst.msk [vmem:[#allocation0] sm:$0x1] %vm13_vm1, %v12_v3  }
  0x84   :  { %v17_v4 = vld [vmem:[#allocation0] sm:$0x1] }
  0x85   :  { %20 = vst [vmem:[%s40_s1] sm:$0x1] %v17_v4 }

// kernel: squeeze.2
= control target key start
LH: loop header
LB: loop body
LE: loop exit
PB: predicated region body
PF: predicated region fallthrough
CT: control target
= control target key end

     0   :  { %vm7_vm0 = vcmask 130048   ;;  %s39_s0 = inlined_call_operand.vmem [shape: f32[32], index: 0, kind: input, shape index: {}]   ;;  %s40_s1 = inlined_call_operand.vmem [shape: f32[2,16], index: 1, kind: output, shape index: {}]  }
   0x1   :  { %v4_v0 = vld [vmem:[%s39_s0] sm:$0x1]  ;;  %s22_s0 = smov 112  }
   0x2   :  { %5 = vst [vmem:[#allocation1] sm:$0x1] %v4_v0 }
   0x9   :  { %v9_v1 = vld [vmem:[#allocation1] sm:$0x1]  }
   0xa   :  { %v6_v2 = vld [vmem:[#allocation1] sm:$0x1]   ;;  %10 = vrot.lane.b32.xlu0 %v9_v1, %s22_s0 }
   0xb   :  { %8 = vst.msk [vmem:[#allocation0] sm:$0x1] %vm7_vm0, %v6_v2  }
  0x7c   :  { %v11_v3 = vpop.permute.xlu0 %10  }
  0x7d   :  { %14 = vst.msk [vmem:[#allocation0 + $0x1] sm:$0x1] %vm7_vm0, %v11_v3  }
  0x84   :  { %v17_v4 = vld [vmem:[#allocation0] sm:$0x3] }
  0x85   :  { %20 = vst [vmem:[%s40_s1] sm:$0x3] %v17_v4 }

// kernel: _lambda_.4
= control target key start
LH: loop header
LB: loop body
LE: loop exit
PB: predicated region body
PF: predicated region fallthrough
CT: control target
= control target key end

     0   :  { %s1996_s25 = smov 0   ;;  %s1998_s26 = smov 0   ;;  %s2183_s0 = inlined_call_operand.vmem [shape: f32[2,1,32,32], index: 0, kind: input, shape index: {}]   ;;  %s2184_s1 = inlined_call_operand.vmem [shape: bf16[2,160,32], index: 1, kind: input, shape index: {}]   ;;  %s2185_s2 = inlined_call_operand.vmem [shape: bf16[2,96,32], index: 2, kind: input, shape index: {}]   ;;  %s2186_s3 = inlined_call_operand.vmem [shape: bf16[2,96,32], index: 3, kind: input, shape index: {}]   ;;  %s2187_s4 = inlined_call_operand.vmem [shape: bf16[2,160,32], index: 4, kind: input, shape index: {}]   ;;  %s2188_s5 = inlined_call_operand.vmem [shape: bf16[2,96,32], index: 5, kind: input, shape index: {}]   ;;  %s2189_s6 = inlined_call_operand.vmem [shape: bf16[2,96,32], index: 6, kind: input, shape index: {}]   ;;  %s2190_s7 = inlined_call_operand.vmem [shape: f32[2,1,32], index: 7, kind: input, shape index: {}]   ;;  %s2191_s8 = inlined_call_operand.vmem [shape: f32[2,1,32], index: 8, kind: input, shape index: {}]   ;;  %s2192_s9 = inlined_call_operand.vmem [shape: f32[2,1,32], index: 9, kind: input, shape index: {}]   ;;  %s2193_s10 = inlined_call_operand.vmem [shape: f32[2,1,32], index: 10, kind: input, shape index: {}]   ;;  %s2194_s11 = inlined_call_operand.vmem [shape: f32[2,1,32], index: 11, kind: input, shape index: {}]   ;;  %s2195_s12 = inlined_call_operand.vmem [shape: f32[2,1,32], index: 12, kind: input, shape index: {}]   ;;  %s2196_s13 = inlined_call_operand.vmem [shape: f32[2,1,1,32], index: 13, kind: output, shape index: {}]  }
   0x1   :  { %s2000_s27 = smov 0  }
   0x2 LB: > { %s35_s28 = sadd.s32 1, %s1916_s26  ;;  %p1584_p0 = scmp.ge.s32.totalorder %s1920_s27, 1  ;;  %s1920_s27 = sphi %s2000_s27, %s23_s27   ;;  %s1916_s26 = sphi %s1998_s26, %s2198_s26   ;;  %s1912_s25 = sphi %s1996_s25, %s2197_s25  }
   0x3   : > { %p37_p1 = scmp.ge.s32.totalorder %s35_s28, 2  ;;  %p515_p2 = scmp.lt.s32.totalorder %s1920_s27, 3 }
   0x5   : > { %s2200_s28 = smov (%p37_p1, %s35_s28), 0  ;;  %p516_p3 = pnand %p1584_p0, %p515_p2 }
   0x6   : > { %p612_p4 = scmp.lt.s32.totalorder (!%p516_p3), %s1912_s25, 1  ;;  %s1922_s20 = smov (!%p516_p3), 32  }
   0x7   : > { %519 = sbr.rel (%p516_p3) target bundleno = 1643 (0x66b), region = 72  ;;  %s1923_s21 = smov (!%p516_p3), 96  }
   0x8   : > { %s1924_s22 = smov (!%p516_p3), 64  }
   0xc   : > { %s2202_s25 = smov (!%p612_p4, %s1912_s25), 1  ;;  %vm697_vm0 = vcmask 1046528   ;;  %vm716_vm1 = vcmask 1045504   ;;  %vm722_vm2 = vcmask 261120   ;;  %vm725_vm3 = vcmask 523264  }
   0xd   : > { %s1780_s29 = sshll.u32 %s2202_s25, 5  ;;  %s1825_s30 = smul.u32 80, %s2202_s25  ;;  %vm728_vm4 = vcmask 785408   ;;  %vm851_vm5 = vcmask 259072   ;;  %vm952_vm6 = vcmask 257024   ;;  %vm1053_vm7 = vcmask 254976  }
   0xe   : > { %s620_s16 = scalar_lea.vmem %s2183_s0, %s1780_s29  ;;  %s653_s29 = scalar_lea.vmem %s2190_s7, %s2202_s25  ;;  %vm1067_vm8 = vcmask 1044480   ;;  %vm1074_vm9 = vcmask 1043456   ;;  %vm1378_vm11 = vcmask 253952  }
   0xf   : > { %v1594_v0 = vld [vmem:[%s620_s16 + $0x1] ss:$2 sm:$0xff]  ;;  %v1595_v1 = vld [vmem:[%s620_s16 + $0x11] ss:$2 sm:$0x7f]  ;;  %s2026_s19 = scalar_lea.vmem %s2184_s1, %s1825_s30  ;;  %s2066_s17 = smul.u32 48, %s2202_s25 }
  0x10   : > { %v685_v2 = vmax.f32 %v1594_v0, 0.0  ;;  %v686_v3 = vmax.f32 %v1595_v1, 0.0  ;;  %v676_v4 = vld [vmem:[%s620_s16] ss:$2 sm:$0xff]  ;;  %v1593_v5 = vld [vmem:[%s620_s16 + $0x10] ss:$2 sm:$0xff]  ;;  %s656_s16 = scalar_lea.vmem %s2191_s8, %s2202_s25  ;;  %s659_s18 = scalar_lea.vmem %s2192_s9, %s2202_s25 }
  0x11   : > { %v679_v6 = vmax.f32 %v676_v4, 0.0  ;;  %v680_v7 = vmax.f32 %v1593_v5, 0.0  ;;  %v1788_v8 = vld [vmem:[%s2026_s19 + $0x38] sm:$0xff]  ;;  %v1787_v14 = vld [vmem:[%s2026_s19 + $0x30] sm:$0xff]  ;;  %v1786_v18 = vld [vmem:[%s2026_s19 + $0x28] sm:$0xff]  ;;  %s630_s23 = scalar_lea.vmem %s2185_s2, %s2066_s17  ;;  %s2106_s14 = scalar_lea.vmem %s2187_s4, %s1825_s30 }
  0x12   : > { %v1855_v9 = vpack.i.bf16 %v686_v3, %v685_v2  ;;  %v707_v10 = vrot.slane %v685_v2, 1  ;;  %v708_v11 = vrot.slane %v686_v3, 1  ;;  %820 = vmatpush.bf16.msra.mxu0 %v1788_v8  ;;  %v1785_v20 = vld [vmem:[%s2026_s19 + $0x20] sm:$0xff]  ;;  %v1784_v21 = vld [vmem:[%s2026_s19 + $0x18] sm:$0xff]  ;;  %v1790_v22 = vld [vmem:[%s2026_s19 + $0x48] sm:$0xff]  ;;  %s665_s24 = scalar_lea.vmem %s2194_s11, %s2202_s25  ;;  %s645_s15 = scalar_lea.vmem %s2188_s5, %s2066_s17 }
  0x13   : > { %v698_v12 = vrot.slane %v679_v6, 1  ;;  %v699_v13 = vrot.slane %v680_v7, 1  ;;  %840 = vmatpush.bf16.msra.mxu1 %v1790_v22  ;;  %v1783_v23 = vld [vmem:[%s2026_s19 + $0x10] sm:$0xff]  ;;  %v1789_v24 = vld [vmem:[%s2026_s19 + $0x40] sm:$0xff]  ;;  %v1782_v25 = vld [vmem:[%s2026_s19 + $0x8] sm:$0xff]  ;;  %v717_v26 = vrot.slane %v679_v6, 2 }
  0x14   : > { %1856 = vrot.lane.b32.xlu0 %v1855_v9, %s1922_s20  ;;  %v709_v15 = vsel %vm697_vm0, %v707_v10, %v708_v11  ;;  %v718_v27 = vrot.slane %v680_v7, 2  ;;  %v1781_v30 = vld [vmem:[%s2026_s19] sm:$0xff]  ;;  %v1796_v4 = vld [vmem:[%s630_s23 + $0x28] sm:$0xff]  ;;  %s662_s19 = scalar_lea.vmem %s2193_s10, %s2202_s25 }
  0x15   : > { %v700_v16 = vsel %vm697_vm0, %v698_v12, %v699_v13  ;;  %v1865_v17 = vpack.i.bf16 %v708_v11, %v709_v15  ;;  %v1890_v47 = vld [vmem:[%s653_s29] ss:$0 sm:$0xff]  ;;  %937 = vmatpush.bf16.msra.mxu2 %v1796_v4  ;;  %v1792_v8 = vld [vmem:[%s630_s23 + $0x8] sm:$0xff]  ;;  %s668_s29 = scalar_lea.vmem %s2195_s12, %s2202_s25 }
  0x16   : > { %821 = vmatpush.bf16.msra.mxu0 %v1787_v14  ;;  %v1860_v19 = vpack.i.bf16 %v699_v13, %v700_v16  ;;  %v719_v28 = vsel %vm716_vm1, %v717_v26, %v718_v27  ;;  %v1795_v5 = vld [vmem:[%s630_s23 + $0x20] sm:$0xff] }
  0x17   : > { %1866 = vrot.lane.b32.xlu1 %v1865_v17, %s1923_s21  ;;  %841 = vmatpush.bf16.msra.mxu1 %v1789_v24  ;;  %v732_v29 = vpack.c.bf16 %v718_v27, %v719_v28  ;;  %v1791_v9 = vld [vmem:[%s630_s23] sm:$0xff] }
  0x19   : > { %938 = vmatpush.bf16.msra.mxu2 %v1795_v5 }
  0x1a   : > { %822 = vmatpush.bf16.msra.mxu0 %v1786_v18  ;;  %1636 = vmatmul.msk.bf16.vlgmr.msra.gmra.mxu1 %vm722_vm2, %v732_v29 }
  0x1c   : > { %1861 = vrot.lane.b32.xlu0 %v1860_v19, %s1924_s22 }
  0x1e   : > { %823 = vmatpush.bf16.msra.mxu0 %v1785_v20 }
  0x22   : > { %824 = vmatpush.bf16.msra.mxu0 %v1784_v21  ;;  %v1891_v21 = vld [vmem:[%s656_s16] ss:$0 sm:$0xff] }
  0x26   : > { %825 = vmatpush.bf16.msra.mxu0 %v1783_v23 }
  0x2a   : > { %826 = vmatpush.bf16.msra.mxu0 %v1782_v25 }
  0x2e   : > { %827 = vmatpush.bf16.msra.mxu0 %v1781_v30 }
  0x86   : > { %v1857_v31 = vpop.permute.xlu0 %1856 }
  0x87   : > { %v1859_v33 = vunpack.i.h.bf16 %v1857_v31  ;;  %v1858_v34 = vunpack.i.l.bf16 %v1857_v31 }
  0x89   : > { %v1867_v32 = vpop.permute.xlu1 %1866  ;;  %v723_v40 = vsel %vm722_vm2, %v679_v6, %v1858_v34  ;;  %v724_v41 = vsel %vm722_vm2, %v680_v7, %v1859_v33  ;;  %v1794_v6 = vld [vmem:[%s630_s23 + $0x18] sm:$0xff]  ;;  %v1793_v7 = vld [vmem:[%s630_s23 + $0x10] sm:$0xff]  ;;  %s635_s23 = scalar_lea.vmem %s2186_s3, %s2066_s17 }
  0x8a   : > { %v1869_v36 = vunpack.i.h.bf16 %v1867_v32  ;;  %v1868_v37 = vunpack.i.l.bf16 %v1867_v32  ;;  %939 = vmatpush.bf16.msra.mxu2 %v1794_v6 }
  0x8e   : > { %v1862_v35 = vpop.permute.xlu0 %1861  ;;  %940 = vmatpush.bf16.msra.mxu2 %v1793_v7 }
  0x8f   : > { %v1864_v38 = vunpack.i.h.bf16 %v1862_v35  ;;  %v1863_v39 = vunpack.i.l.bf16 %v1862_v35 }
  0x91   : > { %v726_v42 = vsel %vm725_vm3, %v723_v40, %v1863_v39  ;;  %v727_v43 = vsel %vm725_vm3, %v724_v41, %v1864_v38  ;;  %v1802_v38 = vld [vmem:[%s635_s23 + $0x28] sm:$0xff]  ;;  %v1801_v39 = vld [vmem:[%s635_s23 + $0x20] sm:$0xff]  ;;  %v1800_v40 = vld [vmem:[%s635_s23 + $0x18] sm:$0xff] }
  0x92   : > { %v729_v44 = vsel %vm728_vm4, %v726_v42, %v1868_v37  ;;  %v730_v45 = vsel %vm728_vm4, %v727_v43, %v1869_v36  ;;  %941 = vmatpush.bf16.msra.mxu2 %v1792_v8  ;;  %1038 = vmatpush.bf16.msra.mxu3 %v1802_v38  ;;  %v1799_v41 = vld [vmem:[%s635_s23 + $0x10] sm:$0xff]  ;;  %v1798_v42 = vld [vmem:[%s635_s23 + $0x8] sm:$0xff]  ;;  %v1797_v43 = vld [vmem:[%s635_s23] sm:$0xff] }
  0x93   : > { %v731_v46 = vpack.c.bf16 %v730_v45, %v729_v44  ;;  %v1817_v38 = vld [vmem:[%s645_s15 + $0x20] sm:$0xff] }
  0x95   : > { %828 = vmatmul.bf16.vlgmr.msra.gmra.mxu0 %v731_v46 }
  0x96   : > { %942 = vmatpush.bf16.msra.mxu2 %v1791_v9  ;;  %1039 = vmatpush.bf16.msra.mxu3 %v1801_v39  ;;  %v1816_v39 = vld [vmem:[%s645_s15 + $0x18] sm:$0xff] }
  0x97   : > { %v843_v48 = vpop.f32.mrf.mxu1 }
  0x9a   : > { %1040 = vmatpush.bf16.msra.mxu3 %v1800_v40  ;;  %v1815_v40 = vld [vmem:[%s645_s15 + $0x10] sm:$0xff] }
  0x9e   : > { %1041 = vmatpush.bf16.msra.mxu3 %v1799_v41  ;;  %v1814_v41 = vld [vmem:[%s645_s15 + $0x8] sm:$0xff] }
  0x9f   : > { %v845_v55 = vpop.f32.mrf.mxu1 }
  0xa2   : > { %1042 = vmatpush.bf16.msra.mxu3 %v1798_v42  ;;  %v1813_v42 = vld [vmem:[%s645_s15] sm:$0xff] }
  0xa6   : > { %1043 = vmatpush.bf16.msra.mxu3 %v1797_v43 }
 0x112   : > { %v829_v49 = vpop.f32.mrf.mxu0 }
 0x113   : > { %v830_v50 = vadd.f32 %v1890_v47, %v829_v49 }
 0x115   : > { %v844_v51 = vadd.f32 %v843_v48, %v830_v50 }
 0x117   : > { %v848_v52 = vmax.f32 %v844_v51, 0.0 }
 0x119   : > { %850 = vst.msk [vmem:[#allocation3] sm:$0xff] %vm722_vm2, %v848_v52 }
 0x11a   : > { %v831_v53 = vpop.f32.mrf.mxu0 }
 0x11b   : > { %v832_v54 = vadd.f32 %v1890_v47, %v831_v53 }
 0x11d   : > { %v846_v56 = vadd.f32 %v845_v55, %v832_v54  ;;  %v1812_v55 = vld [vmem:[%s2106_s14 + $0x48] sm:$0xff] }
 0x11e   : > { %1190 = vmatpush.bf16.msrb.mxu2 %v1812_v55 }
 0x11f   : > { %v849_v57 = vmax.f32 %v846_v56, 0.0  ;;  %v1811_v56 = vld [vmem:[%s2106_s14 + $0x40] sm:$0xff] }
 0x120   : > { %v853_v58 = vld [vmem:[#allocation3] sm:$0xff] }
 0x121   : > { %852 = vst.msk [vmem:[#allocation3 + $0x8] sm:$0x3f] %vm851_vm5, %v849_v57  ;;  %v866_v60 = vrot.slane %v853_v58, 2  ;;  %v857_v62 = vrot.slane %v853_v58, 1  ;;  %v1892_v57 = vld [vmem:[%s659_s18] ss:$0 sm:$0xff]  ;;  %s650_s18 = scalar_lea.vmem %s2189_s6, %s2066_s17 }
 0x122   : > { %1191 = vmatpush.bf16.msrb.mxu2 %v1811_v56 }
 0x128   : > { %v854_v59 = vld [vmem:[#allocation3 + $0x8] sm:$0x3f] }
 0x129   : > { %v867_v61 = vrot.slane %v854_v59, 2  ;;  %v858_v63 = vrot.slane %v854_v59, 1 }
 0x12b   : > { %v868_v0 = vsel %vm716_vm1, %v866_v60, %v867_v61  ;;  %v859_v1 = vsel %vm697_vm0, %v857_v62, %v858_v63 }
 0x12c   : > { %v1875_v2 = vpack.i.bf16 %v867_v61, %v868_v0  ;;  %v1870_v3 = vpack.i.bf16 %v858_v63, %v859_v1 }
 0x12e   : > { %1876 = vrot.lane.b32.xlu2 %v1875_v2, %s1924_s22  ;;  %1871 = vrot.lane.b32.xlu1 %v1870_v3, %s1922_s20 }
 0x188   : > { %v1877_v10 = vpop.permute.xlu2 %1876 }
 0x189   : > { %v1879_v14 = vunpack.i.h.bf16 %v1877_v10  ;;  %v1878_v15 = vunpack.i.l.bf16 %v1877_v10 }
 0x1a0   : > { %v1872_v11 = vpop.permute.xlu1 %1871 }
 0x1a1   : > { %v1874_v12 = vunpack.i.h.bf16 %v1872_v11  ;;  %v1873_v13 = vunpack.i.l.bf16 %v1872_v11  ;;  %v1810_v11 = vld [vmem:[%s2106_s14 + $0x38] sm:$0xff] }
 0x1a2   : > { %1171 = vmatpush.bf16.msrb.mxu1 %v1810_v11 }
 0x1a3   : > { %v876_v16 = vsel %vm722_vm2, %v854_v59, %v1874_v12  ;;  %v875_v17 = vsel %vm722_vm2, %v853_v58, %v1873_v13  ;;  %v1809_v12 = vld [vmem:[%s2106_s14 + $0x30] sm:$0xff]  ;;  %v1808_v13 = vld [vmem:[%s2106_s14 + $0x28] sm:$0xff] }
 0x1a4   : > { %v877_v18 = vsel %vm725_vm3, %v875_v17, %v1878_v15  ;;  %v878_v19 = vsel %vm725_vm3, %v876_v16, %v1879_v14  ;;  %v1807_v14 = vld [vmem:[%s2106_s14 + $0x20] sm:$0xff]  ;;  %v1806_v15 = vld [vmem:[%s2106_s14 + $0x18] sm:$0xff]  ;;  %v1805_v16 = vld [vmem:[%s2106_s14 + $0x10] sm:$0xff] }
 0x1a5   : > { %v879_v20 = vpack.c.bf16 %v878_v19, %v877_v18  ;;  %v1804_v17 = vld [vmem:[%s2106_s14 + $0x8] sm:$0xff]  ;;  %v1803_v18 = vld [vmem:[%s2106_s14] sm:$0xff] }
 0x1a6   : > { %1172 = vmatpush.bf16.msrb.mxu1 %v1809_v12 }
 0x1a7   : > { %1661 = vmatmul.msk.bf16.vlgmr.msra.gmra.mxu2 %vm728_vm4, %v879_v20 }
 0x1aa   : > { %1173 = vmatpush.bf16.msrb.mxu1 %v1808_v13 }
 0x1ae   : > { %1174 = vmatpush.bf16.msrb.mxu1 %v1807_v14 }
 0x1b2   : > { %1175 = vmatpush.bf16.msrb.mxu1 %v1806_v15 }
 0x1b6   : > { %1176 = vmatpush.bf16.msrb.mxu1 %v1805_v16 }
 0x1ba   : > { %1177 = vmatpush.bf16.msrb.mxu1 %v1804_v17 }
 0x1be   : > { %1178 = vmatpush.bf16.msrb.mxu1 %v1803_v18 }
 0x22a   : > { %v944_v22 = vpop.f32.mrf.mxu2 }
 0x22b   : > { %v945_v23 = vadd.f32 %v1891_v21, %v944_v22 }
 0x22d   : > { %v949_v24 = vmax.f32 %v945_v23, 0.0 }
 0x22f   : > { %951 = vst.msk [vmem:[#allocation2] sm:$0xff] %vm722_vm2, %v949_v24 }
 0x232   : > { %v946_v25 = vpop.f32.mrf.mxu2 }
 0x233   : > { %v947_v26 = vadd.f32 %v1891_v21, %v946_v25 }
 0x235   : > { %v950_v27 = vmax.f32 %v947_v26, 0.0 }
 0x236   : > { %v954_v28 = vld [vmem:[#allocation2] sm:$0xff] }
 0x237   : > { %953 = vst.msk [vmem:[#allocation2 + $0x8] sm:$0xf] %vm952_vm6, %v950_v27  ;;  %v967_v30 = vrot.slane %v954_v28, 2  ;;  %v958_v32 = vrot.slane %v954_v28, 1 }
 0x23e   : > { %v955_v29 = vld [vmem:[#allocation2 + $0x8] sm:$0xf] }
 0x23f   : > { %v968_v31 = vrot.slane %v955_v29, 2  ;;  %v959_v33 = vrot.slane %v955_v29, 1 }
 0x241   : > { %v969_v34 = vsel %vm716_vm1, %v967_v30, %v968_v31  ;;  %v960_v35 = vsel %vm697_vm0, %v958_v32, %v959_v33 }
 0x242   : > { %v1885_v36 = vpack.i.bf16 %v968_v31, %v969_v34  ;;  %v1880_v37 = vpack.i.bf16 %v959_v33, %v960_v35 }
 0x244   : > { %1886 = vrot.lane.b32.xlu0 %v1885_v36, %s1924_s22  ;;  %1881 = vrot.lane.b32.xlu2 %v1880_v37, %s1922_s20  ;;  %v1818_v37 = vld [vmem:[%s645_s15 + $0x28] sm:$0xff] }
 0x245   : > { %1269 = vmatpush.bf16.msrb.mxu3 %v1818_v37 }
 0x249   : > { %1270 = vmatpush.bf16.msrb.mxu3 %v1817_v38 }
 0x24d   : > { %1271 = vmatpush.bf16.msrb.mxu3 %v1816_v39 }
 0x251   : > { %1272 = vmatpush.bf16.msrb.mxu3 %v1815_v40 }
 0x255   : > { %1273 = vmatpush.bf16.msrb.mxu3 %v1814_v41 }
 0x259   : > { %1274 = vmatpush.bf16.msrb.mxu3 %v1813_v42 }
 0x29e   : > { %v1882_v44 = vpop.permute.xlu2 %1881 }
 0x29f   : > { %v1884_v45 = vunpack.i.h.bf16 %v1882_v44  ;;  %v1883_v46 = vunpack.i.l.bf16 %v1882_v44 }
 0x2a1   : > { %v977_v50 = vsel %vm722_vm2, %v955_v29, %v1884_v45  ;;  %v976_v51 = vsel %vm722_vm2, %v954_v28, %v1883_v46  ;;  %v1893_v28 = vld [vmem:[%s662_s19] ss:$0 sm:$0xff] }
 0x2b6   : > { %v1887_v47 = vpop.permute.xlu0 %1886 }
 0x2b7   : > { %v1889_v48 = vunpack.i.h.bf16 %v1887_v47  ;;  %v1888_v49 = vunpack.i.l.bf16 %v1887_v47 }
 0x2b9   : > { %v978_v52 = vsel %vm725_vm3, %v976_v51, %v1888_v49  ;;  %v979_v53 = vsel %vm725_vm3, %v977_v50, %v1889_v48  ;;  %v1824_v48 = vld [vmem:[%s650_s18 + $0x28] sm:$0xff]  ;;  %v1823_v49 = vld [vmem:[%s650_s18 + $0x20] sm:$0xff]  ;;  %v1822_v50 = vld [vmem:[%s650_s18 + $0x18] sm:$0xff] }
 0x2ba   : > { %v980_v54 = vpack.c.bf16 %v979_v53, %v978_v52  ;;  %1352 = vmatpush.bf16.msrb.mxu0 %v1824_v48  ;;  %v1821_v51 = vld [vmem:[%s650_s18 + $0x10] sm:$0xff]  ;;  %v1894_v52 = vld [vmem:[%s665_s24] ss:$0 sm:$0xff]  ;;  %v1820_v53 = vld [vmem:[%s650_s18 + $0x8] sm:$0xff]  ;;  %s674_s24 = scalar_lea.vmem %s2196_s13, %s2202_s25 }
 0x2bc   : > { %1686 = vmatmul.msk.bf16.vlgmr.msra.gmra.mxu3 %vm728_vm4, %v980_v54 }
 0x2be   : > { %1353 = vmatpush.bf16.msrb.mxu0 %v1823_v49 }
 0x2c2   : > { %1354 = vmatpush.bf16.msrb.mxu0 %v1822_v50 }
 0x2c6   : > { %1355 = vmatpush.bf16.msrb.mxu0 %v1821_v51 }
 0x2ca   : > { %1356 = vmatpush.bf16.msrb.mxu0 %v1820_v53 }
 0x33f   : > { %v1045_v58 = vpop.f32.mrf.mxu3 }
 0x340   : > { %v1046_v59 = vadd.f32 %v1892_v57, %v1045_v58 }
 0x342   : > { %v1050_v60 = vmax.f32 %v1046_v59, 0.0 }
 0x344   : > { %1052 = vst.msk [vmem:[#allocation3] sm:$0xff] %vm722_vm2, %v1050_v60 }
 0x347   : > { %v1047_v61 = vpop.f32.mrf.mxu3 }
 0x348   : > { %v1048_v62 = vadd.f32 %v1892_v57, %v1047_v61  ;;  %v1819_v61 = vld [vmem:[%s650_s18] sm:$0xff] }
 0x349   : > { %1357 = vmatpush.bf16.msrb.mxu0 %v1819_v61 }
 0x34a   : > { %v1051_v63 = vmax.f32 %v1048_v62, 0.0 }
 0x34b   : > { %v1055_v0 = vld [vmem:[#allocation3] sm:$0xff] }
 0x34c   : > { %1054 = vst.msk [vmem:[#allocation3 + $0x8] sm:$0x3] %vm1053_vm7, %v1051_v63  ;;  %v1062_v1 = vrot.slane %v1055_v0, 2  ;;  %v1058_v2 = vrot.slane %v1055_v0, 1  ;;  %v1068_v4 = vrot.slane %v1055_v0, 3  ;;  %v1075_v7 = vrot.slane %v1055_v0, 4 }
 0x34e   : > { %1063 = vrot.lane.b32.xlu2 %v1062_v1, %s1924_s22  ;;  %1059 = vrot.lane.b32.xlu1 %v1058_v2, %s1922_s20 }
 0x353   : > { %v1056_v3 = vld [vmem:[#allocation3 + $0x8] sm:$0x3] }
 0x354   : > { %v1069_v5 = vrot.slane %v1056_v3, 3  ;;  %v1076_v6 = vrot.slane %v1056_v3, 4  ;;  %v1925_v3 = vmov 2.0  }
 0x355   : > { %1896 = vrcp.f32 %v1925_v3 }
 0x356   : > { %v1070_v8 = vsel %vm1067_vm8, %v1068_v4, %v1069_v5  ;;  %v1077_v9 = vsel %vm1074_vm9, %v1075_v7, %v1076_v6  ;;  %v1895_v5 = vld [vmem:[%s668_s29] ss:$0 sm:$0xff] }
 0x357   : > { %1071 = vrot.lane.b32.xlu0 %v1070_v8, %s1923_s21  ;;  %v1083_v10 = vpack.c.bf16 %v1077_v9, %v1077_v9 }
 0x359   : > { %1727 = vmatmul.msk.bf16.vlgmr.msrb.gmra.mxu2 %vm722_vm2, %v1083_v10 }
 0x35b   : > { %v1897_v4 = vpop.eup %1896 }
 0x35c   : > { %v1371_v6 = vmul.f32 2.0, %v1897_v4  ;;  %vm1375_vm10 = vweird.f32 %v1897_v4 }
 0x35e   : > { %v1372_v9 = vsub.f32 1.0, %v1371_v6 }
 0x360   : > { %v1373_v12 = vmul.f32 %v1897_v4, %v1372_v9 }
 0x362   : > { %v1374_v16 = vadd.f32 %v1897_v4, %v1373_v12 }
 0x3a8   : > { %v1064_v21 = vpop.permute.xlu2 %1063 }
 0x3c0   : > { %v1060_v19 = vpop.permute.xlu1 %1059 }
 0x3c1   : > { %v1079_v20 = vsel %vm722_vm2, %v1055_v0, %v1060_v19  ;;  %v1376_v19 = vsel %vm1375_vm10, %v1897_v4, %v1374_v16 }
 0x3c2   : > { %v1080_v23 = vsel %vm725_vm3, %v1079_v20, %v1064_v21 }
 0x3c9   : > { %v1072_v22 = vpop.permute.xlu0 %1071 }
 0x3ca   : > { %v1081_v24 = vsel %vm728_vm4, %v1080_v23, %v1072_v22 }
 0x3cb   : > { %v1082_v25 = vpack.c.bf16 %v1081_v24, %v1081_v24 }
 0x3cd   : > { %1179 = vmatmul.bf16.vlgmr.msrb.gmra.mxu1 %v1082_v25 }
 0x3dc   : > { %v1193_v26 = vpop.f32.mrf.mxu2 }
 0x3e4   : > { %v1195_v27 = vpop.f32.mrf.mxu2 }
 0x44a   : > { %v1180_v29 = vpop.f32.mrf.mxu1 }
 0x44b   : > { %v1181_v30 = vadd.f32 %v1893_v28, %v1180_v29 }
 0x44d   : > { %v1194_v31 = vadd.f32 %v1193_v26, %v1181_v30 }
 0x44f   : > { %v1197_v32 = vmax.f32 %v1194_v31, 0.0 }
 0x451   : > { %1198 = vst.msk [vmem:[#allocation2] sm:$0x3f] %vm851_vm5, %v1197_v32 }
 0x452   : > { %v1182_v33 = vpop.f32.mrf.mxu1 }
 0x458   : > { %v1199_v34 = vld [vmem:[#allocation2] sm:$0x3f] }
 0x459   : > { %v1205_v35 = vrot.slane %v1199_v34, 2  ;;  %v1201_v36 = vrot.slane %v1199_v34, 1 }
 0x45b   : > { %1206 = vrot.lane.b32.xlu2 %v1205_v35, %s1924_s22  ;;  %1202 = vrot.lane.b32.xlu1 %v1201_v36, %s1922_s20 }
 0x4b5   : > { %v1207_v44 = vpop.permute.xlu2 %1206 }
 0x4cd   : > { %v1203_v43 = vpop.permute.xlu1 %1202 }
 0x4ce   : > { %v1209_v45 = vsel %vm722_vm2, %v1199_v34, %v1203_v43 }
 0x4cf   : > { %v1210_v46 = vsel %vm725_vm3, %v1209_v45, %v1207_v44 }
 0x4d0   : > { %v1211_v47 = vpack.c.bf16 %v1210_v46, %v1210_v46 }
 0x4d2   : > { %1752 = vmatmul.msk.bf16.vlgmr.msrb.gmra.mxu3 %vm728_vm4, %v1211_v47 }
 0x555   : > { %v1276_v54 = vpop.f32.mrf.mxu3 }
 0x556   : > { %v1277_v55 = vadd.f32 %v1894_v52, %v1276_v54 }
 0x558   : > { %v1280_v56 = vmax.f32 %v1277_v55, 0.0 }
 0x55a   : > { %1281 = vst.msk [vmem:[#allocation3] sm:$0xf] %vm952_vm6, %v1280_v56 }
 0x55d   : > { %v1278_v57 = vpop.f32.mrf.mxu3 }
 0x561   : > { %v1282_v58 = vld [vmem:[#allocation3] sm:$0xf] }
 0x562   : > { %v1288_v59 = vrot.slane %v1282_v58, 2  ;;  %v1284_v60 = vrot.slane %v1282_v58, 1 }
 0x564   : > { %1289 = vrot.lane.b32.xlu1 %v1288_v59, %s1924_s22  ;;  %1285 = vrot.lane.b32.xlu0 %v1284_v60, %s1922_s20 }
 0x5d6   : > { %v1290_v62 = vpop.permute.xlu1 %1289  ;;  %v1286_v63 = vpop.permute.xlu0 %1285 }
 0x5d7   : > { %v1292_v0 = vsel %vm722_vm2, %v1282_v58, %v1286_v63 }
 0x5d8   : > { %v1293_v1 = vsel %vm725_vm3, %v1292_v0, %v1290_v62 }
 0x5d9   : > { %v1294_v2 = vpack.c.bf16 %v1293_v1, %v1293_v1 }
 0x5db   : > { %1777 = vmatmul.msk.bf16.vlgmr.msrb.gmra.mxu0 %vm728_vm4, %v1294_v2 }
 0x658   : > { %v1359_v7 = vpop.f32.mrf.mxu0 }
 0x659   : > { %v1360_v8 = vadd.f32 %v1895_v5, %v1359_v7 }
 0x65b   : > { %v1363_v10 = vsel %vm1053_vm7, %v1360_v8, 0.0 }
 0x65c   : > { %v1364_v11 = vrot.slane %v1363_v10, 4 }
 0x65e   : > { %v1365_v13 = vadd.f32 %v1364_v11, %v1363_v10 }
 0x660   : > { %v1366_v14 = vrot.slane %v1365_v13, 2  ;;  %v1361_v15 = vpop.f32.mrf.mxu0 }
 0x662   : > { %v1367_v17 = vadd.f32 %v1366_v14, %v1365_v13 }
 0x664   : > { %v1368_v18 = vrot.slane %v1367_v17, 1 }
 0x666   : > { %v1369_v20 = vadd.f32 %v1368_v18, %v1367_v17 }
 0x668   : > { %v1377_v21 = vmul.f32 %v1376_v19, %v1369_v20 }
 0x66a   : > { %1379 = vst.msk [vmem:[%s674_s24] sm:$0x1] %vm1378_vm11, %v1377_v21 }
 0x66b PF: > { %s23_s27 = sadd.s32 1, %s1920_s27   ;;  %s2197_s25 = smov %s1916_s26 }
 0x66c   : > { %p20_p5 = scmp.ge.s32.totalorder %s23_s27, 4   ;;  %s2198_s26 = smov %s2200_s28 }
 0x66e   :  { %22 = sbr.rel (!%p20_p5) target bundleno = 2 (0x2), region = 141 }

// kernel: _lambda_.5
= control target key start
LH: loop header
LB: loop body
LE: loop exit
PB: predicated region body
PF: predicated region fallthrough
CT: control target
= control target key end

     0   :  { %s282_s0 = inlined_call_operand.vmem [shape: f32[2,48], index: 0, kind: input, shape index: {}]   ;;  %s283_s1 = inlined_call_operand.vmem [shape: f32[48,128], index: 1, kind: input, shape index: {}]   ;;  %s284_s2 = inlined_call_operand.vmem [shape: f32[1,128], index: 2, kind: input, shape index: {}]   ;;  %s285_s3 = inlined_call_operand.vmem [shape: f32[128,128], index: 3, kind: input, shape index: {}]   ;;  %s286_s4 = inlined_call_operand.vmem [shape: f32[1,128], index: 4, kind: input, shape index: {}]   ;;  %s287_s5 = inlined_call_operand.hbm [shape: f32[2,128], index: 5, kind: output, shape index: {}]  }
   0x1   :  { %v27_v0 = vld [vmem:[%s283_s1 + $0x28] sm:$0xff]  ;;  %v26_v1 = vld [vmem:[%s283_s1 + $0x20] sm:$0xff]  ;;  %v25_v2 = vld [vmem:[%s283_s1 + $0x18] sm:$0xff] }
   0x2   :  { %46 = vmatpush.msra.mxu0 %v27_v0  ;;  %v72_v3 = vld [vmem:[%s285_s3 + $0x78] sm:$0xff]  ;;  %v71_v4 = vld [vmem:[%s285_s3 + $0x70] sm:$0xff]  ;;  %v70_v6 = vld [vmem:[%s285_s3 + $0x68] sm:$0xff] }
   0x3   :  { %77 = vmatpush.msra.mxu1 %v72_v3  ;;  %v24_v5 = vld [vmem:[%s283_s1 + $0x10] sm:$0xff]  ;;  %v23_v7 = vld [vmem:[%s283_s1 + $0x8] sm:$0xff]  ;;  %v69_v8 = vld [vmem:[%s285_s3 + $0x60] sm:$0xff] }
   0x4   :  { %47 = vmatpush.msra.mxu0 %v26_v1 }
   0x5   :  { %78 = vmatpush.msra.mxu1 %v71_v4 }
   0x6   :  { %48 = vmatpush.msra.mxu0 %v25_v2 }
   0x7   :  { %79 = vmatpush.msra.mxu1 %v70_v6 }
   0x8   :  { %49 = vmatpush.msra.mxu0 %v24_v5 }
   0x9   :  { %10 = vsyncpa [#allocation3], 0  ;;  %v22_v9 = vld [vmem:[%s283_s1] sm:$0xff]  ;;  %v68_v10 = vld [vmem:[%s285_s3 + $0x58] sm:$0xff]  ;;  %vm32_vm0 = vcmask 392192   ;;  %80 = vmatpush.msra.mxu1 %v69_v8  ;;  %vm97_vm1 = vcmask 1041408  }
   0xa   :  { %50 = vmatpush.msra.mxu0 %v23_v7  ;;  %v21_v11 = vld [vmem:[%s282_s0] sm:$0x3]  ;;  %v67_v12 = vld [vmem:[%s285_s3 + $0x50] sm:$0xff]  ;;  %v66_v13 = vld [vmem:[%s285_s3 + $0x48] sm:$0xff]  ;;  %s130_s17 = sshll.u32 %s287_s5, 4  ;;  %s131_s17 = int_to_ptr.hbm [resolvable:$true] %s130_s17 }
   0xb   :  { %81 = vmatpush.msra.mxu1 %v68_v10  ;;  %v65_v14 = vld [vmem:[%s285_s3 + $0x40] sm:$0xff]  ;;  %v64_v15 = vld [vmem:[%s285_s3 + $0x38] sm:$0xff]  ;;  %v63_v16 = vld [vmem:[%s285_s3 + $0x30] sm:$0xff] }
   0xc   :  { %51 = vmatpush.msra.mxu0 %v22_v9  ;;  %v62_v17 = vld [vmem:[%s285_s3 + $0x28] sm:$0xff]  ;;  %v61_v18 = vld [vmem:[%s285_s3 + $0x20] sm:$0xff]  ;;  %v60_v19 = vld [vmem:[%s285_s3 + $0x18] sm:$0xff] }
   0xd   :  { %139 = vmatmul.msk.f32.vlgmr.msra.gmra.mxu0 %vm32_vm0, %v21_v11  ;;  %82 = vmatpush.msra.mxu1 %v67_v12  ;;  %v59_v20 = vld [vmem:[%s285_s3 + $0x10] sm:$0xff]  ;;  %v58_v21 = vld [vmem:[%s285_s3 + $0x8] sm:$0xff]  ;;  %v57_v22 = vld [vmem:[%s285_s3] sm:$0xff] }
   0xe   :  { %v141_v23 = vld [vmem:[%s284_s2] ss:$0 sm:$0xff]  ;;  %s173_s2 = smov [#allocation2]  }
   0xf   :  { %83 = vmatpush.msra.mxu1 %v66_v13  ;;  %v142_v27 = vld [vmem:[%s286_s4] ss:$0 sm:$0xff]  ;;  %s128_s3 = sshll.u32 %s173_s2, 4  ;;  %s129_s3 = int_to_ptr.vmem [resolvable:$true] %s128_s3 }
  0x11   :  { %84 = vmatpush.msra.mxu1 %v65_v14 }
  0x13   :  { %85 = vmatpush.msra.mxu1 %v64_v15 }
  0x15   :  { %86 = vmatpush.msra.mxu1 %v63_v16 }
  0x17   :  { %87 = vmatpush.msra.mxu1 %v62_v17 }
  0x19   :  { %88 = vmatpush.msra.mxu1 %v61_v18 }
  0x1b   :  { %89 = vmatpush.msra.mxu1 %v60_v19 }
  0x1d   :  { %90 = vmatpush.msra.mxu1 %v59_v20 }
  0x1f   :  { %91 = vmatpush.msra.mxu1 %v58_v21 }
  0x21   :  { %92 = vmatpush.msra.mxu1 %v57_v22 }
  0x8a   :  { %v53_v24 = vpop.f32.mrf.mxu0 }
  0x8b   :  { %v54_v25 = vadd.f32 %v141_v23, %v53_v24 }
  0x8d   :  { %v56_v26 = vmax.f32 %v54_v25, 0.0 }
  0x8f   :  { %93 = vmatmul.f32.vlgmr.msra.gmra.mxu1 %v56_v26 }
 0x10c   :  { %v94_v28 = vpop.f32.mrf.mxu1 }
 0x10d   :  { %v95_v29 = vadd.f32 %v142_v27, %v94_v28 }
 0x10f   :  { %v98_v30 = vsel %vm97_vm1, %v95_v29, -inf }
 0x110   :  { %99 = vmax.xlane.f32.xlu0 %v98_v30 }
 0x183   :  { %v100_v31 = vpop.xlane.xlu0 %99 }
 0x184   :  { %v101_v32 = vsub.f32 %v95_v29, %v100_v31 }
 0x186   :  { %v102_v33 = vmul.f32 1.442695, %v101_v32 }
 0x188   :  { %143 = vpow2.f32 %v102_v33 }
 0x18e   :  { %v144_v34 = vpop.eup %143 }
 0x18f   :  { %v104_v35 = vsel %vm97_vm1, %v144_v34, 0.0 }
 0x190   :  { %105 = vadd.xlane.f32.xlu0 %v104_v35 }
 0x203   :  { %v106_v36 = vpop.xlane.xlu0 %105 }
 0x204   :  { %145 = vrcp.f32 %v106_v36  ;;  %v118_v40 = vand.u32 2147483648, %v106_v36  ;;  %v116_v42 = vand.u32 2147483647, %v106_v36  ;;  %vm112_vm3 = vweird.f32 %v106_v36 }
 0x206   :  { %v119_v44 = vor.u32 1.1754944e-38, %v118_v40  ;;  %vm117_vm5 = vcmp.eq.f32.partialorder %v116_v42, 8.507059e+37 }
 0x20a   :  { %v146_v37 = vpop.eup %145 }
 0x20b   :  { %v108_v38 = vmul.f32 %v146_v37, %v106_v36  ;;  %vm113_vm2 = vweird.f32 %v146_v37 }
 0x20c   :  { %vm114_vm4 = vmor %vm112_vm3, %vm113_vm2 }
 0x20d   :  { %v109_v39 = vsub.f32 1.0, %v108_v38 }
 0x20f   :  { %v110_v41 = vmul.f32 %v146_v37, %v109_v39 }
 0x211   :  { %v111_v43 = vadd.f32 %v146_v37, %v110_v41 }
 0x213   :  { %v115_v45 = vsel %vm114_vm4, %v146_v37, %v111_v43 }
 0x214   :  { %v120_v46 = vsel %vm117_vm5, %v119_v44, %v115_v45 }
 0x215   :  { %v121_v47 = vmul.f32 %v144_v34, %v120_v46 }
 0x217   :  { %122 = vst [vmem:[#allocation2] sm:$0x3] %v121_v47 }
 0x218   :  { %133 = dma.vmem_to_hbm [thread:$0]  %s129_s3, 32, %s131_s17, [#allocation3]  }
 0x219   :  { %171 = dma.done.wait [#allocation3], 32  }
 0x21a   :  { %172 = vsyncadd [#allocation3], 4294967264 }
 0x21b   :  { %138 = vsyncpa [#allocation3], 1 }

// kernel: _lambda_.3
= control target key start
LH: loop header
LB: loop body
LE: loop exit
PB: predicated region body
PF: predicated region fallthrough
CT: control target
= control target key end

     0   :  { %vm144_vm0 = vcmask 1046528   ;;  %s1601_s22 = smov 96   ;;  %s1602_s27 = smov 32   ;;  %vm213_vm1 = vcmask 1045504   ;;  %vm225_vm2 = vcmask 261120   ;;  %vm230_vm3 = vcmask 523264   ;;  %s2061_s0 = inlined_call_operand.vmem [shape: f32[1,1,128,32], index: 0, kind: input, shape index: {}]   ;;  %s2062_s1 = inlined_call_operand.vmem [shape: bf16[1,288,32], index: 1, kind: input, shape index: {}]   ;;  %s2063_s7 = inlined_call_operand.vmem [shape: f32[1,1,32], index: 7, kind: input, shape index: {}]   ;;  %s2064_s2 = inlined_call_operand.vmem [shape: bf16[1,96,32], index: 2, kind: input, shape index: {}]   ;;  %s2065_s8 = inlined_call_operand.vmem [shape: f32[1,1,32], index: 8, kind: input, shape index: {}]   ;;  %s2066_s3 = inlined_call_operand.vmem [shape: bf16[1,96,32], index: 3, kind: input, shape index: {}]   ;;  %s2067_s9 = inlined_call_operand.vmem [shape: f32[1,1,32], index: 9, kind: input, shape index: {}]   ;;  %s2068_s4 = inlined_call_operand.vmem [shape: bf16[1,288,32], index: 4, kind: input, shape index: {}]   ;;  %s2069_s10 = inlined_call_operand.vmem [shape: f32[1,1,32], index: 10, kind: input, shape index: {}]   ;;  %s2070_s5 = inlined_call_operand.vmem [shape: bf16[1,96,32], index: 5, kind: input, shape index: {}]   ;;  %s2071_s11 = inlined_call_operand.vmem [shape: f32[1,1,32], index: 11, kind: input, shape index: {}]   ;;  %s2072_s6 = inlined_call_operand.vmem [shape: bf16[1,96,32], index: 6, kind: input, shape index: {}]   ;;  %s2073_s12 = inlined_call_operand.vmem [shape: f32[1,1,32], index: 12, kind: input, shape index: {}]   ;;  %s2074_s13 = inlined_call_operand.vmem [shape: f32[1,1,1,32], index: 13, kind: output, shape index: {}]  }
   0x1   :  { %v1180_v0 = vld [vmem:[%s2061_s0 + $0x3] ss:$4 sm:$0xff]  ;;  %v1172_v2 = vld [vmem:[%s2061_s0 + $0x1] ss:$4 sm:$0xff]  ;;  %v1176_v8 = vld [vmem:[%s2061_s0 + $0x2] ss:$4 sm:$0xff] }
   0x2   :  { %v1181_v1 = vld [vmem:[%s2061_s0 + $0x23] ss:$4 sm:$0xff]  ;;  %v88_v3 = vmax.f32 %v1180_v0, 0.0  ;;  %v1173_v5 = vld [vmem:[%s2061_s0 + $0x21] ss:$4 sm:$0xff]  ;;  %v64_v6 = vmax.f32 %v1172_v2, 0.0 }
   0x3   :  { %v89_v4 = vmax.f32 %v1181_v1, 0.0  ;;  %v65_v7 = vmax.f32 %v1173_v5, 0.0  ;;  %v1177_v11 = vld [vmem:[%s2061_s0 + $0x22] ss:$4 sm:$0xff]  ;;  %v1174_v12 = vld [vmem:[%s2061_s0 + $0x41] ss:$4 sm:$0xff] }
   0x4   :  { %v156_v10 = vrot.slane %v64_v6, 1  ;;  %v76_v15 = vmax.f32 %v1176_v8, 0.0  ;;  %v66_v16 = vmax.f32 %v1174_v12, 0.0  ;;  %v1178_v17 = vld [vmem:[%s2061_s0 + $0x42] ss:$4 sm:$0xff]  ;;  %v77_v19 = vmax.f32 %v1177_v11, 0.0 }
   0x5   :  { %v1506_v9 = vpack.i.bf16 %v89_v4, %v88_v3  ;;  %v157_v13 = vrot.slane %v65_v7, 1  ;;  %v1496_v14 = vpack.i.bf16 %v65_v7, %v64_v6  ;;  %v1702_v18 = vld [vmem:[%s2061_s0 + $0x43] ss:$4 sm:$0xff]  ;;  %v78_v20 = vmax.f32 %v1178_v17, 0.0  ;;  %s1603_s29 = smov 64  }
   0x6   :  { %v175_v21 = vrot.slane %v76_v15, 1  ;;  %v1440_v22 = vld [vmem:[%s2062_s1 + $0x38] sm:$0xff]  ;;  %v159_v24 = vrot.slane %v66_v16, 1  ;;  %v176_v26 = vrot.slane %v77_v19, 1  ;;  %v90_v27 = vmax.f32 %v1702_v18, 0.0  ;;  %v1439_v29 = vld [vmem:[%s2062_s1 + $0x30] sm:$0xff] }
   0x7   :  { %1507 = vrot.lane.b32.xlu1 %v1506_v9, %s1601_s22  ;;  %1497 = vrot.lane.b32.xlu0 %v1496_v14, %s1602_s27  ;;  %v158_v23 = vsel %vm144_vm0, %v156_v10, %v157_v13  ;;  %v178_v25 = vrot.slane %v78_v20, 1  ;;  %v1448_v28 = vld [vmem:[%s2062_s1 + $0x78] sm:$0xff]  ;;  %v195_v30 = vrot.slane %v89_v4, 1  ;;  %v194_v31 = vrot.slane %v88_v3, 1  ;;  %v1447_v38 = vld [vmem:[%s2062_s1 + $0x70] sm:$0xff] }
   0x8   :  { %412 = vmatpush.bf16.msra.mxu0 %v1440_v22  ;;  %v160_v32 = vsel %vm144_vm0, %v157_v13, %v159_v24  ;;  %v1501_v33 = vpack.i.bf16 %v77_v19, %v76_v15  ;;  %v1179_v35 = vld [vmem:[%s2061_s0 + $0x62] ss:$4 sm:$0x7f]  ;;  %v177_v36 = vsel %vm144_vm0, %v175_v21, %v176_v26  ;;  %431 = vmatpush.bf16.msra.mxu1 %v1448_v28  ;;  %v1175_v40 = vld [vmem:[%s2061_s0 + $0x61] ss:$4 sm:$0x7f] }
   0x9   :  { %v1511_v34 = vpack.i.bf16 %v160_v32, %v158_v23  ;;  %v179_v37 = vsel %vm144_vm0, %v176_v26, %v178_v25  ;;  %v1450_v39 = vld [vmem:[%s2062_s1 + $0x88] sm:$0xff]  ;;  %v197_v42 = vrot.slane %v90_v27, 1  ;;  %v79_v44 = vmax.f32 %v1179_v35, 0.0  ;;  %v1437_v49 = vld [vmem:[%s2062_s1 + $0x20] sm:$0xff]  ;;  %v1436_v57 = vld [vmem:[%s2062_s1 + $0x18] sm:$0xff] }
   0xa   :  { %v1516_v41 = vpack.i.bf16 %v179_v37, %v177_v36  ;;  %v1438_v43 = vld [vmem:[%s2062_s1 + $0x28] sm:$0xff]  ;;  %456 = vmatpush.bf16.msra.mxu2 %v1450_v39  ;;  %v67_v45 = vmax.f32 %v1175_v40, 0.0  ;;  %v196_v46 = vsel %vm144_vm0, %v194_v31, %v195_v30  ;;  %v1445_v55 = vld [vmem:[%s2062_s1 + $0x60] sm:$0xff]  ;;  %v1444_v9 = vld [vmem:[%s2062_s1 + $0x58] sm:$0xff]  ;;  %vm235_vm4 = vcmask 785408  }
   0xb   :  { %v198_v47 = vsel %vm144_vm0, %v195_v30, %v197_v42  ;;  %v1446_v48 = vld [vmem:[%s2062_s1 + $0x68] sm:$0xff]  ;;  %v1531_v50 = vpack.i.bf16 %v79_v44, %v78_v20  ;;  %v180_v53 = vrot.slane %v79_v44, 1  ;;  %v1449_v10 = vld [vmem:[%s2062_s1 + $0x80] sm:$0xff]  ;;  %v1435_v14 = vld [vmem:[%s2062_s1 + $0x10] sm:$0xff]  ;;  %vm476_vm5 = vcmask 259072  }
   0xc   :  { %413 = vmatpush.bf16.msra.mxu0 %v1439_v29  ;;  %1517 = vrot.lane.b32.xlu2 %v1516_v41, %s1603_s29  ;;  %v1521_v51 = vpack.i.bf16 %v198_v47, %v196_v46  ;;  %v1526_v52 = vpack.i.bf16 %v67_v45, %v66_v16  ;;  %v1183_v54 = vld [vmem:[%s2061_s0 + $0x63] ss:$4 sm:$0x7f]  ;;  %v161_v56 = vrot.slane %v67_v45, 1  ;;  %v45_v3 = vld [vmem:[%s2061_s0] ss:$4 sm:$0xff] }
   0xd   :  { %432 = vmatpush.bf16.msra.mxu1 %v1447_v38  ;;  %v91_v58 = vmax.f32 %v1183_v54, 0.0  ;;  %v181_v59 = vsel %vm144_vm0, %v178_v25, %v180_v53  ;;  %v1169_v4 = vld [vmem:[%s2061_s0 + $0x20] ss:$4 sm:$0xff]  ;;  %v52_v6 = vmax.f32 %v45_v3, 0.0  ;;  %vm618_vm6 = vcmask 257024  }
   0xe   :  { %v162_v60 = vsel %vm144_vm0, %v159_v24, %v161_v56  ;;  %v1546_v61 = vpack.i.bf16 %v180_v53, %v181_v59  ;;  %v1170_v5 = vld [vmem:[%s2061_s0 + $0x40] ss:$4 sm:$0xff]  ;;  %v53_v7 = vmax.f32 %v1169_v4, 0.0  ;;  %457 = vmatpush.bf16.msra.mxu2 %v1449_v10  ;;  %vm760_vm7 = vcmask 254976  }
   0xf   :  { %1512 = vrot.lane.b32.xlu1 %v1511_v34, %s1602_s27  ;;  %1502 = vrot.lane.b32.xlu0 %v1501_v33, %s1603_s29  ;;  %v1536_v62 = vpack.i.bf16 %v91_v58, %v90_v27  ;;  %v1541_v63 = vpack.i.bf16 %v161_v56, %v162_v60  ;;  %v199_v0 = vrot.slane %v91_v58, 1  ;;  %v1773_v8 = vmax.f32 %v1170_v5, 0.0  ;;  %v1443_v17 = vld [vmem:[%s2062_s1 + $0x50] sm:$0xff]  ;;  %v1434_v19 = vld [vmem:[%s2062_s1 + $0x8] sm:$0xff] }
  0x10   :  { %414 = vmatpush.bf16.msra.mxu0 %v1438_v43  ;;  %v214_v11 = vrot.slane %v52_v6, 2  ;;  %v215_v12 = vrot.slane %v53_v7, 2  ;;  %v1442_v20 = vld [vmem:[%s2062_s1 + $0x48] sm:$0xff]  ;;  %v1433_v21 = vld [vmem:[%s2062_s1] sm:$0xff]  ;;  %v145_v31 = vrot.slane %v52_v6, 1  ;;  %v146_v32 = vrot.slane %v53_v7, 1 }
  0x11   :  { %433 = vmatpush.bf16.msra.mxu1 %v1446_v48  ;;  %v200_v1 = vsel %vm144_vm0, %v197_v42, %v199_v0  ;;  %v217_v13 = vrot.slane %v1773_v8, 2  ;;  %v1441_v22 = vld [vmem:[%s2062_s1 + $0x40] sm:$0xff]  ;;  %v148_v33 = vrot.slane %v1773_v8, 1  ;;  %vm998_vm8 = vcmask 258048  }
  0x12   :  { %v1551_v2 = vpack.i.bf16 %v199_v0, %v200_v1  ;;  %v216_v15 = vsel %vm213_vm1, %v214_v11, %v215_v12  ;;  %v1171_v23 = vld [vmem:[%s2061_s0 + $0x60] ss:$4 sm:$0xff]  ;;  %v147_v37 = vsel %vm144_vm0, %v145_v31, %v146_v32  ;;  %vm1082_vm9 = vcmask 256000  }
  0x13   :  { %v218_v16 = vsel %vm213_vm1, %v215_v12, %v217_v13  ;;  %v1806_v24 = vmax.f32 %v1171_v23, 0.0  ;;  %v149_v38 = vsel %vm144_vm0, %v146_v32, %v148_v33  ;;  %vm1163_vm10 = vcmask 253952  }
  0x14   :  { %415 = vmatpush.bf16.msra.mxu0 %v1437_v49  ;;  %1522 = vrot.lane.b32.xlu2 %v1521_v51, %s1601_s22  ;;  %v254_v18 = vpack.c.bf16 %v218_v16, %v216_v15 }
  0x15   :  { %434 = vmatpush.bf16.msra.mxu1 %v1445_v55  ;;  %v219_v25 = vrot.slane %v1806_v24, 2  ;;  %v150_v11 = vrot.slane %v1806_v24, 1 }
  0x16   :  { %1256 = vmatmul.msk.bf16.vlgmr.msra.gmra.mxu2 %vm225_vm2, %v254_v18 }
  0x17   :  { %1532 = vrot.lane.b32.xlu1 %v1531_v50, %s1603_s29  ;;  %1527 = vrot.lane.b32.xlu0 %v1526_v52, %s1602_s27  ;;  %v220_v26 = vsel %vm213_vm1, %v217_v13, %v219_v25 }
  0x18   :  { %416 = vmatpush.bf16.msra.mxu0 %v1436_v57  ;;  %v257_v27 = vpack.c.bf16 %v219_v25, %v220_v26 }
  0x19   :  { %435 = vmatpush.bf16.msra.mxu1 %v1444_v9 }
  0x1c   :  { %1537 = vrot.lane.b32.xlu2 %v1536_v62, %s1601_s22  ;;  %417 = vmatpush.bf16.msra.mxu0 %v1435_v14 }
  0x1d   :  { %436 = vmatpush.bf16.msra.mxu1 %v1443_v17 }
  0x1f   :  { %1547 = vrot.lane.b32.xlu1 %v1546_v61, %s1603_s29  ;;  %1542 = vrot.lane.b32.xlu0 %v1541_v63, %s1602_s27 }
  0x20   :  { %418 = vmatpush.bf16.msra.mxu0 %v1434_v19  ;;  %v151_v19 = vsel %vm144_vm0, %v148_v33, %v150_v11 }
  0x21   :  { %437 = vmatpush.bf16.msra.mxu1 %v1442_v20 }
  0x24   :  { %1552 = vrot.lane.b32.xlu2 %v1551_v2, %s1601_s22  ;;  %419 = vmatpush.bf16.msra.mxu0 %v1433_v21 }
  0x25   :  { %438 = vmatpush.bf16.msra.mxu1 %v1441_v22 }
  0x26   :  { %1257 = vmatmul.msk.bf16.gmra.mxu2 %vm225_vm2, %v257_v27 }
  0x66   :  { %v1518_v28 = vpop.permute.xlu2 %1517 }
  0x67   :  { %v1520_v39 = vunpack.i.h.bf16 %v1518_v28  ;;  %v1519_v40 = vunpack.i.l.bf16 %v1518_v28 }
  0x6e   :  { %v1523_v34 = vpop.permute.xlu2 %1522 }
  0x6f   :  { %v1525_v45 = vunpack.i.h.bf16 %v1523_v34  ;;  %v1524_v46 = vunpack.i.l.bf16 %v1523_v34 }
  0x76   :  { %v1538_v63 = vpop.permute.xlu2 %1537 }
  0x77   :  { %v1540_v12 = vunpack.i.h.bf16 %v1538_v63  ;;  %v1539_v13 = vunpack.i.l.bf16 %v1538_v63 }
  0x79   :  { %v1508_v29 = vpop.permute.xlu1 %1507  ;;  %v1498_v30 = vpop.permute.xlu0 %1497 }
  0x7a   :  { %v1500_v35 = vunpack.i.h.bf16 %v1498_v30  ;;  %v1499_v36 = vunpack.i.l.bf16 %v1498_v30  ;;  %v1510_v47 = vunpack.i.h.bf16 %v1508_v29  ;;  %v1509_v48 = vunpack.i.l.bf16 %v1508_v29 }
  0x7c   :  { %v226_v51 = vsel %vm225_vm2, %v52_v6, %v1499_v36  ;;  %v227_v52 = vsel %vm225_vm2, %v53_v7, %v1500_v35  ;;  %v1596_v36 = vld [vmem:[%s2063_s7] ss:$0 sm:$0xff] }
  0x7e   :  { %v1553_v14 = vpop.permute.xlu2 %1552 }
  0x7f   :  { %v1555_v23 = vunpack.i.h.bf16 %v1553_v14  ;;  %v1554_v25 = vunpack.i.l.bf16 %v1553_v14 }
  0x81   :  { %v1513_v41 = vpop.permute.xlu1 %1512  ;;  %v1503_v42 = vpop.permute.xlu0 %1502 }
  0x82   :  { %v1515_v43 = vunpack.i.h.bf16 %v1513_v41  ;;  %v1514_v44 = vunpack.i.l.bf16 %v1513_v41  ;;  %v1505_v49 = vunpack.i.h.bf16 %v1503_v42  ;;  %v1504_v50 = vunpack.i.l.bf16 %v1503_v42 }
  0x84   :  { %v240_v53 = vsel %vm225_vm2, %v147_v37, %v1514_v44  ;;  %v241_v54 = vsel %vm225_vm2, %v149_v38, %v1515_v43  ;;  %v231_v55 = vsel %vm230_vm3, %v226_v51, %v1504_v50  ;;  %v232_v56 = vsel %vm230_vm3, %v227_v52, %v1505_v49  ;;  %v1456_v49 = vld [vmem:[%s2064_s2 + $0x28] sm:$0xff] }
  0x85   :  { %v244_v57 = vsel %vm230_vm3, %v240_v53, %v1519_v40  ;;  %v245_v58 = vsel %vm230_vm3, %v241_v54, %v1520_v39  ;;  %v236_v59 = vsel %vm235_vm4, %v231_v55, %v1509_v48  ;;  %v237_v60 = vsel %vm235_vm4, %v232_v56, %v1510_v47  ;;  %594 = vmatpush.bf16.msra.mxu3 %v1456_v49 }
  0x86   :  { %v248_v61 = vsel %vm235_vm4, %v244_v57, %v1524_v46  ;;  %v249_v62 = vsel %vm235_vm4, %v245_v58, %v1525_v45  ;;  %v252_v0 = vpack.c.bf16 %v237_v60, %v236_v59 }
  0x87   :  { %v253_v1 = vpack.c.bf16 %v249_v62, %v248_v61 }
  0x88   :  { %420 = vmatmul.bf16.vlgmr.msra.gmra.mxu0 %v252_v0 }
  0x89   :  { %439 = vmatmul.bf16.vlgmr.msra.gmra.mxu1 %v253_v1  ;;  %v1533_v2 = vpop.permute.xlu1 %1532  ;;  %v1528_v3 = vpop.permute.xlu0 %1527 }
  0x8a   :  { %v1530_v4 = vunpack.i.h.bf16 %v1528_v3  ;;  %v1529_v5 = vunpack.i.l.bf16 %v1528_v3  ;;  %v1535_v6 = vunpack.i.h.bf16 %v1533_v2  ;;  %v1534_v7 = vunpack.i.l.bf16 %v1533_v2 }
  0x8c   :  { %v228_v9 = vsel %vm225_vm2, %v1773_v8, %v1529_v5  ;;  %v229_v10 = vsel %vm225_vm2, %v1806_v24, %v1530_v4 }
  0x8d   :  { %v233_v16 = vsel %vm230_vm3, %v228_v9, %v1534_v7  ;;  %v234_v17 = vsel %vm230_vm3, %v229_v10, %v1535_v6 }
  0x8e   :  { %v238_v26 = vsel %vm235_vm4, %v233_v16, %v1539_v13  ;;  %v239_v24 = vsel %vm235_vm4, %v234_v17, %v1540_v12 }
  0x8f   :  { %v255_v31 = vpack.c.bf16 %v239_v24, %v238_v26  ;;  %v1453_v26 = vld [vmem:[%s2064_s2 + $0x10] sm:$0xff]  ;;  %v1452_v24 = vld [vmem:[%s2064_s2 + $0x8] sm:$0xff] }
  0x91   :  { %v1548_v15 = vpop.permute.xlu1 %1547  ;;  %v1543_v18 = vpop.permute.xlu0 %1542 }
  0x92   :  { %v1550_v20 = vunpack.i.h.bf16 %v1548_v15  ;;  %v1549_v21 = vunpack.i.l.bf16 %v1548_v15  ;;  %v1545_v22 = vunpack.i.h.bf16 %v1543_v18  ;;  %v1544_v8 = vunpack.i.l.bf16 %v1543_v18 }
  0x94   :  { %v242_v27 = vsel %vm225_vm2, %v151_v19, %v1544_v8  ;;  %v243_v28 = vsel %vm225_vm2, %v150_v11, %v1545_v22 }
  0x95   :  { %v246_v29 = vsel %vm230_vm3, %v242_v27, %v1549_v21  ;;  %v247_v30 = vsel %vm230_vm3, %v243_v28, %v1550_v20  ;;  %v1451_v27 = vld [vmem:[%s2064_s2] sm:$0xff] }
  0x96   :  { %v250_v32 = vsel %vm235_vm4, %v246_v29, %v1554_v25  ;;  %v251_v33 = vsel %vm235_vm4, %v247_v30, %v1555_v23  ;;  %v1455_v23 = vld [vmem:[%s2064_s2 + $0x20] sm:$0xff]  ;;  %v1454_v25 = vld [vmem:[%s2064_s2 + $0x18] sm:$0xff] }
  0x97   :  { %v256_v34 = vpack.c.bf16 %v251_v33, %v250_v32  ;;  %595 = vmatpush.bf16.msra.mxu3 %v1455_v23  ;;  %v1460_v23 = vld [vmem:[%s2066_s3 + $0x18] sm:$0xff] }
  0x98   :  { %425 = vmatmul.bf16.gmra.mxu0 %v255_v31 }
  0x99   :  { %444 = vmatmul.bf16.gmra.mxu1 %v256_v34  ;;  %v459_v35 = vpop.f32.mrf.mxu2 }
  0x9b   :  { %596 = vmatpush.bf16.msra.mxu3 %v1454_v25  ;;  %v1459_v25 = vld [vmem:[%s2066_s3 + $0x10] sm:$0xff] }
  0x9f   :  { %597 = vmatpush.bf16.msra.mxu3 %v1453_v26  ;;  %v1458_v26 = vld [vmem:[%s2066_s3 + $0x8] sm:$0xff] }
  0xa1   :  { %v461_v43 = vpop.f32.mrf.mxu2 }
  0xa3   :  { %598 = vmatpush.bf16.msra.mxu3 %v1452_v24  ;;  %v1457_v24 = vld [vmem:[%s2066_s3] sm:$0xff] }
  0xa7   :  { %599 = vmatpush.bf16.msra.mxu3 %v1451_v27 }
  0xa9   :  { %v464_v54 = vpop.f32.mrf.mxu2 }
  0xb1   :  { %v466_v62 = vpop.f32.mrf.mxu2 }
 0x105   :  { %v421_v37 = vpop.f32.mrf.mxu0 }
 0x106   :  { %v440_v38 = vpop.f32.mrf.mxu1  ;;  %v422_v39 = vadd.f32 %v1596_v36, %v421_v37 }
 0x108   :  { %v441_v40 = vadd.f32 %v440_v38, %v422_v39 }
 0x10a   :  { %v460_v41 = vadd.f32 %v459_v35, %v441_v40 }
 0x10c   :  { %v469_v42 = vmax.f32 %v460_v41, 0.0 }
 0x10d   :  { %v423_v44 = vpop.f32.mrf.mxu0 }
 0x10e   :  { %v442_v45 = vpop.f32.mrf.mxu1  ;;  %473 = vst.msk [vmem:[#allocation3] sm:$0xff] %vm225_vm2, %v469_v42  ;;  %v424_v46 = vadd.f32 %v1596_v36, %v423_v44 }
 0x110   :  { %v443_v47 = vadd.f32 %v442_v45, %v424_v46 }
 0x112   :  { %v462_v48 = vadd.f32 %v461_v43, %v443_v47 }
 0x114   :  { %v470_v50 = vmax.f32 %v462_v48, 0.0 }
 0x115   :  { %v426_v51 = vpop.f32.mrf.mxu0  ;;  %v478_v1 = vld [vmem:[#allocation3] sm:$0xff] }
 0x116   :  { %474 = vst.msk [vmem:[#allocation3 + $0x8] sm:$0xff] %vm225_vm2, %v470_v50  ;;  %v427_v52 = vadd.f32 %v1596_v36, %v426_v51  ;;  %v445_v53 = vpop.f32.mrf.mxu1  ;;  %v505_v6 = vrot.slane %v478_v1, 2  ;;  %v486_v9 = vrot.slane %v478_v1, 1  ;;  %v1597_v50 = vld [vmem:[%s2065_s8] ss:$0 sm:$0xff] }
 0x118   :  { %v446_v55 = vadd.f32 %v445_v53, %v427_v52 }
 0x11a   :  { %v465_v56 = vadd.f32 %v464_v54, %v446_v55 }
 0x11c   :  { %v471_v57 = vmax.f32 %v465_v56, 0.0  ;;  %v1462_v56 = vld [vmem:[%s2066_s3 + $0x28] sm:$0xff] }
 0x11d   :  { %v428_v58 = vpop.f32.mrf.mxu0  ;;  %v479_v63 = vld [vmem:[#allocation3 + $0x8] sm:$0xff]  ;;  %736 = vmatpush.bf16.msrb.mxu2 %v1462_v56 }
 0x11e   :  { %475 = vst.msk [vmem:[#allocation3 + $0x10] sm:$0xff] %vm225_vm2, %v471_v57  ;;  %v429_v59 = vadd.f32 %v1596_v36, %v428_v58  ;;  %v447_v60 = vpop.f32.mrf.mxu1  ;;  %v506_v3 = vrot.slane %v479_v63, 2  ;;  %v487_v4 = vrot.slane %v479_v63, 1 }
 0x120   :  { %v448_v61 = vadd.f32 %v447_v60, %v429_v59  ;;  %v507_v11 = vsel %vm213_vm1, %v505_v6, %v506_v3  ;;  %v488_v13 = vsel %vm144_vm0, %v486_v9, %v487_v4 }
 0x122   :  { %v467_v0 = vadd.f32 %v466_v62, %v448_v61 }
 0x124   :  { %v472_v2 = vmax.f32 %v467_v0, 0.0 }
 0x125   :  { %v480_v5 = vld [vmem:[#allocation3 + $0x10] sm:$0xff] }
 0x126   :  { %477 = vst.msk [vmem:[#allocation3 + $0x18] sm:$0x3f] %vm476_vm5, %v472_v2  ;;  %v508_v7 = vrot.slane %v480_v5, 2  ;;  %v489_v10 = vrot.slane %v480_v5, 1 }
 0x128   :  { %v509_v12 = vsel %vm213_vm1, %v506_v3, %v508_v7  ;;  %v490_v14 = vsel %vm144_vm0, %v487_v4, %v489_v10 }
 0x129   :  { %v1561_v15 = vpack.i.bf16 %v509_v12, %v507_v11  ;;  %v1556_v16 = vpack.i.bf16 %v490_v14, %v488_v13 }
 0x12b   :  { %1562 = vrot.lane.b32.xlu1 %v1561_v15, %s1603_s29  ;;  %1557 = vrot.lane.b32.xlu0 %v1556_v16, %s1602_s27 }
 0x12d   :  { %v481_v17 = vld [vmem:[#allocation3 + $0x18] sm:$0x3f] }
 0x12e   :  { %v491_v18 = vrot.slane %v481_v17, 1  ;;  %v510_v19 = vrot.slane %v481_v17, 2 }
 0x130   :  { %v492_v20 = vsel %vm144_vm0, %v489_v10, %v491_v18  ;;  %v511_v21 = vsel %vm213_vm1, %v508_v7, %v510_v19 }
 0x131   :  { %v1566_v22 = vpack.i.bf16 %v491_v18, %v492_v20  ;;  %v1571_v8 = vpack.i.bf16 %v510_v19, %v511_v21 }
 0x133   :  { %1567 = vrot.lane.b32.xlu2 %v1566_v22, %s1602_s27  ;;  %1572 = vrot.lane.b32.xlu0 %v1571_v8, %s1603_s29  ;;  %v1461_v8 = vld [vmem:[%s2066_s3 + $0x20] sm:$0xff] }
 0x134   :  { %737 = vmatpush.bf16.msrb.mxu2 %v1461_v8  ;;  %v1473_v8 = vld [vmem:[%s2068_s4 + $0x50] sm:$0xff] }
 0x138   :  { %738 = vmatpush.bf16.msrb.mxu2 %v1460_v23  ;;  %v1472_v23 = vld [vmem:[%s2068_s4 + $0x48] sm:$0xff] }
 0x13c   :  { %739 = vmatpush.bf16.msrb.mxu2 %v1459_v25  ;;  %v1471_v25 = vld [vmem:[%s2068_s4 + $0x40] sm:$0xff] }
 0x140   :  { %740 = vmatpush.bf16.msrb.mxu2 %v1458_v26 }
 0x144   :  { %741 = vmatpush.bf16.msrb.mxu2 %v1457_v24 }
 0x18d   :  { %v1568_v39 = vpop.permute.xlu2 %1567 }
 0x18e   :  { %v1570_v41 = vunpack.i.h.bf16 %v1568_v39  ;;  %v1569_v42 = vunpack.i.l.bf16 %v1568_v39 }
 0x190   :  { %v527_v45 = vsel %vm225_vm2, %v481_v17, %v1570_v41  ;;  %v526_v46 = vsel %vm225_vm2, %v480_v5, %v1569_v42 }
 0x19d   :  { %v1563_v28 = vpop.permute.xlu1 %1562  ;;  %v1558_v29 = vpop.permute.xlu0 %1557 }
 0x19e   :  { %v1565_v30 = vunpack.i.h.bf16 %v1563_v28  ;;  %v1564_v31 = vunpack.i.l.bf16 %v1563_v28  ;;  %v1560_v32 = vunpack.i.h.bf16 %v1558_v29  ;;  %v1559_v33 = vunpack.i.l.bf16 %v1558_v29 }
 0x1a0   :  { %v525_v34 = vsel %vm225_vm2, %v479_v63, %v1560_v32  ;;  %v524_v35 = vsel %vm225_vm2, %v478_v1, %v1559_v33 }
 0x1a1   :  { %v528_v36 = vsel %vm230_vm3, %v524_v35, %v1564_v31  ;;  %v529_v37 = vsel %vm230_vm3, %v525_v34, %v1565_v30 }
 0x1a2   :  { %v532_v38 = vpack.c.bf16 %v529_v37, %v528_v36 }
 0x1a4   :  { %1282 = vmatmul.msk.bf16.vlgmr.msra.gmra.mxu3 %vm235_vm4, %v532_v38 }
 0x1a5   :  { %v1573_v40 = vpop.permute.xlu0 %1572 }
 0x1a6   :  { %v1575_v43 = vunpack.i.h.bf16 %v1573_v40  ;;  %v1574_v44 = vunpack.i.l.bf16 %v1573_v40 }
 0x1a8   :  { %v530_v47 = vsel %vm230_vm3, %v526_v46, %v1574_v44  ;;  %v531_v48 = vsel %vm230_vm3, %v527_v45, %v1575_v43 }
 0x1a9   :  { %v533_v49 = vpack.c.bf16 %v531_v48, %v530_v47 }
 0x1b4   :  { %1283 = vmatmul.msk.bf16.gmra.mxu3 %vm235_vm4, %v533_v49  ;;  %v1598_v49 = vld [vmem:[%s2067_s9] ss:$0 sm:$0xff] }
 0x227   :  { %v601_v51 = vpop.f32.mrf.mxu3 }
 0x228   :  { %v602_v52 = vadd.f32 %v1597_v50, %v601_v51 }
 0x22a   :  { %v611_v53 = vmax.f32 %v602_v52, 0.0 }
 0x22c   :  { %615 = vst.msk [vmem:[#allocation2] sm:$0xff] %vm225_vm2, %v611_v53 }
 0x22f   :  { %v603_v54 = vpop.f32.mrf.mxu3 }
 0x230   :  { %v604_v55 = vadd.f32 %v1597_v50, %v603_v54  ;;  %v1479_v54 = vld [vmem:[%s2068_s4 + $0x80] sm:$0xff] }
 0x232   :  { %v612_v57 = vmax.f32 %v604_v55, 0.0 }
 0x233   :  { %v620_v0 = vld [vmem:[#allocation2] sm:$0xff] }
 0x234   :  { %616 = vst.msk [vmem:[#allocation2 + $0x8] sm:$0xff] %vm225_vm2, %v612_v57  ;;  %v647_v5 = vrot.slane %v620_v0, 2  ;;  %v628_v7 = vrot.slane %v620_v0, 1  ;;  %v1470_v57 = vld [vmem:[%s2068_s4 + $0x38] sm:$0xff] }
 0x235   :  { %958 = vmatpush.bf16.msrb.mxu3 %v1470_v57  ;;  %v1483_v57 = vld [vmem:[%s2070_s5 + $0x10] sm:$0xff] }
 0x237   :  { %v606_v58 = vpop.f32.mrf.mxu3 }
 0x238   :  { %v607_v59 = vadd.f32 %v1597_v50, %v606_v58 }
 0x23a   :  { %v613_v60 = vmax.f32 %v607_v59, 0.0 }
 0x23b   :  { %v621_v62 = vld [vmem:[#allocation2 + $0x8] sm:$0xff] }
 0x23c   :  { %617 = vst.msk [vmem:[#allocation2 + $0x10] sm:$0xff] %vm225_vm2, %v613_v60  ;;  %v648_v2 = vrot.slane %v621_v62, 2  ;;  %v629_v3 = vrot.slane %v621_v62, 1 }
 0x23e   :  { %v649_v10 = vsel %vm213_vm1, %v647_v5, %v648_v2  ;;  %v630_v12 = vsel %vm144_vm0, %v628_v7, %v629_v3 }
 0x23f   :  { %v608_v61 = vpop.f32.mrf.mxu3 }
 0x240   :  { %v609_v63 = vadd.f32 %v1597_v50, %v608_v61  ;;  %v1480_v50 = vld [vmem:[%s2068_s4 + $0x88] sm:$0xff] }
 0x241   :  { %990 = vmatpush.bf16.msrb.mxu1 %v1480_v50 }
 0x242   :  { %v614_v1 = vmax.f32 %v609_v63, 0.0 }
 0x243   :  { %v622_v4 = vld [vmem:[#allocation2 + $0x10] sm:$0xff] }
 0x244   :  { %619 = vst.msk [vmem:[#allocation2 + $0x18] sm:$0xf] %vm618_vm6, %v614_v1  ;;  %v650_v6 = vrot.slane %v622_v4, 2  ;;  %v631_v9 = vrot.slane %v622_v4, 1 }
 0x245   :  { %991 = vmatpush.bf16.msrb.mxu1 %v1479_v54 }
 0x246   :  { %v651_v11 = vsel %vm213_vm1, %v648_v2, %v650_v6  ;;  %v632_v13 = vsel %vm144_vm0, %v629_v3, %v631_v9 }
 0x247   :  { %v1581_v14 = vpack.i.bf16 %v651_v11, %v649_v10  ;;  %v1576_v15 = vpack.i.bf16 %v632_v13, %v630_v12  ;;  %v1469_v11 = vld [vmem:[%s2068_s4 + $0x30] sm:$0xff]  ;;  %v1478_v12 = vld [vmem:[%s2068_s4 + $0x78] sm:$0xff]  ;;  %v1468_v13 = vld [vmem:[%s2068_s4 + $0x28] sm:$0xff] }
 0x248   :  { %959 = vmatpush.bf16.msrb.mxu3 %v1469_v11  ;;  %971 = vmatpush.bf16.msrb.mxu0 %v1478_v12  ;;  %v1491_v11 = vld [vmem:[%s2072_s6 + $0x20] sm:$0xff]  ;;  %v1490_v12 = vld [vmem:[%s2072_s6 + $0x18] sm:$0xff] }
 0x249   :  { %1582 = vrot.lane.b32.xlu2 %v1581_v14, %s1603_s29  ;;  %1577 = vrot.lane.b32.xlu1 %v1576_v15, %s1602_s27  ;;  %v1467_v14 = vld [vmem:[%s2068_s4 + $0x20] sm:$0xff]  ;;  %v1477_v15 = vld [vmem:[%s2068_s4 + $0x70] sm:$0xff] }
 0x24b   :  { %v623_v16 = vld [vmem:[#allocation2 + $0x18] sm:$0xf] }
 0x24c   :  { %v633_v17 = vrot.slane %v623_v16, 1  ;;  %v652_v18 = vrot.slane %v623_v16, 2  ;;  %960 = vmatpush.bf16.msrb.mxu3 %v1468_v13  ;;  %972 = vmatpush.bf16.msrb.mxu0 %v1477_v15  ;;  %v1489_v13 = vld [vmem:[%s2072_s6 + $0x10] sm:$0xff]  ;;  %v1487_v15 = vld [vmem:[%s2072_s6] sm:$0xff] }
 0x24e   :  { %v634_v19 = vsel %vm144_vm0, %v631_v9, %v633_v17  ;;  %v653_v20 = vsel %vm213_vm1, %v650_v6, %v652_v18 }
 0x24f   :  { %v1586_v21 = vpack.i.bf16 %v633_v17, %v634_v19  ;;  %v1591_v22 = vpack.i.bf16 %v652_v18, %v653_v20  ;;  %v1476_v17 = vld [vmem:[%s2068_s4 + $0x68] sm:$0xff]  ;;  %v1465_v18 = vld [vmem:[%s2068_s4 + $0x10] sm:$0xff]  ;;  %v1475_v19 = vld [vmem:[%s2068_s4 + $0x60] sm:$0xff] }
 0x250   :  { %961 = vmatpush.bf16.msrb.mxu3 %v1467_v14  ;;  %973 = vmatpush.bf16.msrb.mxu0 %v1476_v17  ;;  %v1464_v20 = vld [vmem:[%s2068_s4 + $0x8] sm:$0xff] }
 0x251   :  { %1587 = vrot.lane.b32.xlu0 %v1586_v21, %s1602_s27  ;;  %1592 = vrot.lane.b32.xlu1 %v1591_v22, %s1603_s29  ;;  %v1474_v21 = vld [vmem:[%s2068_s4 + $0x58] sm:$0xff]  ;;  %v1463_v22 = vld [vmem:[%s2068_s4] sm:$0xff] }
 0x252   :  { %v1488_v14 = vld [vmem:[%s2072_s6 + $0x8] sm:$0xff] }
 0x254   :  { %974 = vmatpush.bf16.msrb.mxu0 %v1475_v19 }
 0x258   :  { %975 = vmatpush.bf16.msrb.mxu0 %v1474_v21  ;;  %v1109_v21 = vld [vmem:[%s2073_s12] sm:$0x1] }
 0x25c   :  { %976 = vmatpush.bf16.msrb.mxu0 %v1473_v8 }
 0x260   :  { %977 = vmatpush.bf16.msrb.mxu0 %v1472_v23 }
 0x264   :  { %978 = vmatpush.bf16.msrb.mxu0 %v1471_v25 }
 0x2a3   :  { %v1583_v27 = vpop.permute.xlu2 %1582 }
 0x2a4   :  { %v1585_v31 = vunpack.i.h.bf16 %v1583_v27  ;;  %v1584_v32 = vunpack.i.l.bf16 %v1583_v27 }
 0x2bb   :  { %v1578_v28 = vpop.permute.xlu1 %1577 }
 0x2bc   :  { %v1580_v29 = vunpack.i.h.bf16 %v1578_v28  ;;  %v1579_v30 = vunpack.i.l.bf16 %v1578_v28 }
 0x2be   :  { %v667_v33 = vsel %vm225_vm2, %v621_v62, %v1580_v29  ;;  %v666_v34 = vsel %vm225_vm2, %v620_v0, %v1579_v30 }
 0x2bf   :  { %v670_v35 = vsel %vm230_vm3, %v666_v34, %v1584_v32  ;;  %v671_v36 = vsel %vm230_vm3, %v667_v33, %v1585_v31 }
 0x2c0   :  { %v674_v37 = vpack.c.bf16 %v671_v36, %v670_v35 }
 0x2c2   :  { %1308 = vmatmul.msk.bf16.vlgmr.msrb.gmra.mxu2 %vm235_vm4, %v674_v37 }
 0x2c3   :  { %v1588_v38 = vpop.permute.xlu0 %1587  ;;  %v1593_v41 = vpop.permute.xlu1 %1592 }
 0x2c4   :  { %v1590_v39 = vunpack.i.h.bf16 %v1588_v38  ;;  %v1589_v40 = vunpack.i.l.bf16 %v1588_v38  ;;  %v1595_v42 = vunpack.i.h.bf16 %v1593_v41  ;;  %v1594_v43 = vunpack.i.l.bf16 %v1593_v41 }
 0x2c6   :  { %v669_v44 = vsel %vm225_vm2, %v623_v16, %v1590_v39  ;;  %v668_v45 = vsel %vm225_vm2, %v622_v4, %v1589_v40  ;;  %v1466_v16 = vld [vmem:[%s2068_s4 + $0x18] sm:$0xff] }
 0x2c7   :  { %v672_v46 = vsel %vm230_vm3, %v668_v45, %v1594_v43  ;;  %v673_v47 = vsel %vm230_vm3, %v669_v44, %v1595_v42  ;;  %962 = vmatpush.bf16.msrb.mxu3 %v1466_v16  ;;  %v1486_v42 = vld [vmem:[%s2070_s5 + $0x28] sm:$0xff]  ;;  %v1599_v43 = vld [vmem:[%s2069_s10] ss:$0 sm:$0xff] }
 0x2c8   :  { %v675_v48 = vpack.c.bf16 %v673_v47, %v672_v46  ;;  %1070 = vmatpush.bf16.msra.mxu2 %v1486_v42 }
 0x2cb   :  { %963 = vmatpush.bf16.msrb.mxu3 %v1465_v18 }
 0x2cf   :  { %964 = vmatpush.bf16.msrb.mxu3 %v1464_v20 }
 0x2d2   :  { %1309 = vmatmul.msk.bf16.gmra.mxu2 %vm235_vm4, %v675_v48 }
 0x2d3   :  { %965 = vmatpush.bf16.msrb.mxu3 %v1463_v22 }
 0x345   :  { %v743_v51 = vpop.f32.mrf.mxu2 }
 0x346   :  { %v744_v52 = vadd.f32 %v1598_v49, %v743_v51 }
 0x348   :  { %v753_v53 = vmax.f32 %v744_v52, 0.0 }
 0x34a   :  { %757 = vst.msk [vmem:[#allocation3] sm:$0xff] %vm225_vm2, %v753_v53 }
 0x34d   :  { %v745_v55 = vpop.f32.mrf.mxu2 }
 0x34e   :  { %v746_v56 = vadd.f32 %v1598_v49, %v745_v55  ;;  %v1485_v55 = vld [vmem:[%s2070_s5 + $0x20] sm:$0xff] }
 0x34f   :  { %1071 = vmatpush.bf16.msra.mxu2 %v1485_v55 }
 0x350   :  { %v754_v58 = vmax.f32 %v746_v56, 0.0  ;;  %v1484_v56 = vld [vmem:[%s2070_s5 + $0x18] sm:$0xff] }
 0x352   :  { %758 = vst.msk [vmem:[#allocation3 + $0x8] sm:$0xff] %vm225_vm2, %v754_v58  ;;  %v1482_v58 = vld [vmem:[%s2070_s5 + $0x8] sm:$0xff] }
 0x353   :  { %1072 = vmatpush.bf16.msra.mxu2 %v1484_v56 }
 0x355   :  { %v748_v59 = vpop.f32.mrf.mxu2 }
 0x356   :  { %v749_v60 = vadd.f32 %v1598_v49, %v748_v59  ;;  %v1481_v59 = vld [vmem:[%s2070_s5] sm:$0xff] }
 0x357   :  { %1073 = vmatpush.bf16.msra.mxu2 %v1483_v57 }
 0x358   :  { %v755_v61 = vmax.f32 %v749_v60, 0.0 }
 0x35a   :  { %759 = vst.msk [vmem:[#allocation3 + $0x10] sm:$0xff] %vm225_vm2, %v755_v61 }
 0x35b   :  { %1074 = vmatpush.bf16.msra.mxu2 %v1482_v58 }
 0x35d   :  { %v750_v62 = vpop.f32.mrf.mxu2 }
 0x35e   :  { %v751_v63 = vadd.f32 %v1598_v49, %v750_v62 }
 0x35f   :  { %1075 = vmatpush.bf16.msra.mxu2 %v1481_v59 }
 0x360   :  { %v756_v0 = vmax.f32 %v751_v63, 0.0 }
 0x361   :  { %v768_v1 = vld [vmem:[#allocation3 + $0x3] ss:$4 sm:$0x3f]  ;;  %v766_v2 = vld [vmem:[#allocation3 + $0x2] ss:$4 sm:$0x3f] }
 0x362   :  { %761 = vst.msk [vmem:[#allocation3 + $0x18] sm:$0x3] %vm760_vm7, %v756_v0  ;;  %778 = vrot.lane.b32.xlu1 %v768_v1, %s1601_s22  ;;  %774 = vrot.lane.b32.xlu0 %v766_v2, %s1603_s29  ;;  %v764_v3 = vld [vmem:[#allocation3 + $0x1] ss:$4 sm:$0x3f]  ;;  %v792_v4 = vrot.slane %v768_v1, 1 }
 0x363   :  { %770 = vrot.lane.b32.xlu2 %v764_v3, %s1602_s27  ;;  %v788_v5 = vrot.slane %v766_v2, 1  ;;  %v784_v6 = vrot.slane %v764_v3, 1  ;;  %v1600_v1 = vld [vmem:[%s2071_s11] ss:$0 sm:$0xff] }
 0x369   :  { %v762_v7 = vld [vmem:[#allocation3] ss:$4 sm:$0x7f] }
 0x36a   :  { %793 = vrot.lane.b32.xlu1 %v792_v4, %s1601_s22  ;;  %789 = vrot.lane.b32.xlu0 %v788_v5, %s1603_s29  ;;  %v796_v9 = vrot.slane %v762_v7, 2  ;;  %v782_v33 = vrot.slane %v762_v7, 1 }
 0x36b   :  { %785 = vrot.lane.b32.xlu2 %v784_v6, %s1602_s27 }
 0x36c   :  { %v806_v10 = vpack.c.bf16 %v796_v9, %v796_v9 }
 0x36e   :  { %1382 = vmatmul.msk.bf16.vlgmr.msrb.gmra.mxu1 %vm225_vm2, %v806_v10  ;;  %v1492_v10 = vld [vmem:[%s2072_s6 + $0x28] sm:$0xff] }
 0x36f   :  { %1151 = vmatpush.bf16.msra.mxu3 %v1492_v10 }
 0x373   :  { %1152 = vmatpush.bf16.msra.mxu3 %v1491_v11 }
 0x377   :  { %1153 = vmatpush.bf16.msra.mxu3 %v1490_v12 }
 0x37b   :  { %1154 = vmatpush.bf16.msra.mxu3 %v1489_v13 }
 0x37f   :  { %1155 = vmatpush.bf16.msra.mxu3 %v1488_v14 }
 0x383   :  { %1156 = vmatpush.bf16.msra.mxu3 %v1487_v15 }
 0x3bd   :  { %v771_v26 = vpop.permute.xlu2 %770 }
 0x3be   :  { %v798_v24 = vsel %vm225_vm2, %v762_v7, %v771_v26 }
 0x3c5   :  { %v786_v32 = vpop.permute.xlu2 %785 }
 0x3c6   :  { %v801_v34 = vsel %vm225_vm2, %v782_v33, %v786_v32 }
 0x3d4   :  { %v779_v27 = vpop.permute.xlu1 %778  ;;  %v775_v28 = vpop.permute.xlu0 %774 }
 0x3d5   :  { %v799_v29 = vsel %vm230_vm3, %v798_v24, %v775_v28 }
 0x3d6   :  { %v800_v30 = vsel %vm235_vm4, %v799_v29, %v779_v27 }
 0x3d7   :  { %v804_v31 = vpack.c.bf16 %v800_v30, %v800_v30 }
 0x3d9   :  { %966 = vmatmul.bf16.vlgmr.msrb.gmra.mxu3 %v804_v31 }
 0x3dc   :  { %v794_v35 = vpop.permute.xlu1 %793  ;;  %v790_v36 = vpop.permute.xlu0 %789 }
 0x3dd   :  { %v802_v37 = vsel %vm230_vm3, %v801_v34, %v790_v36 }
 0x3de   :  { %v803_v38 = vsel %vm235_vm4, %v802_v37, %v794_v35 }
 0x3df   :  { %v805_v39 = vpack.c.bf16 %v803_v38, %v803_v38 }
 0x3e1   :  { %979 = vmatmul.bf16.vlgmr.msrb.gmra.mxu0 %v805_v39 }
 0x3eb   :  { %v993_v40 = vpop.f32.mrf.mxu1 }
 0x3f3   :  { %v995_v41 = vpop.f32.mrf.mxu1 }
 0x45c   :  { %v967_v44 = vpop.f32.mrf.mxu3 }
 0x45d   :  { %v968_v45 = vadd.f32 %v1599_v43, %v967_v44 }
 0x45e   :  { %v980_v46 = vpop.f32.mrf.mxu0 }
 0x45f   :  { %v981_v47 = vadd.f32 %v980_v46, %v968_v45 }
 0x461   :  { %v994_v48 = vadd.f32 %v993_v40, %v981_v47 }
 0x463   :  { %v997_v49 = vmax.f32 %v994_v48, 0.0 }
 0x464   :  { %v969_v50 = vpop.f32.mrf.mxu3 }
 0x465   :  { %999 = vst.msk [vmem:[#allocation2] sm:$0x1f] %vm998_vm8, %v997_v49 }
 0x466   :  { %v982_v51 = vpop.f32.mrf.mxu0 }
 0x46c   :  { %v1000_v52 = vld [vmem:[#allocation2] sm:$0x1f] }
 0x46d   :  { %v1006_v53 = vrot.slane %v1000_v52, 2  ;;  %v1002_v54 = vrot.slane %v1000_v52, 1 }
 0x46f   :  { %1007 = vrot.lane.b32.xlu0 %v1006_v53, %s1603_s29  ;;  %1003 = vrot.lane.b32.xlu2 %v1002_v54, %s1602_s27 }
 0x4c9   :  { %v1004_v60 = vpop.permute.xlu2 %1003 }
 0x4ca   :  { %v1010_v61 = vsel %vm225_vm2, %v1000_v52, %v1004_v60 }
 0x4e1   :  { %v1008_v62 = vpop.permute.xlu0 %1007 }
 0x4e2   :  { %v1011_v63 = vsel %vm230_vm3, %v1010_v61, %v1008_v62 }
 0x4e3   :  { %v1012_v0 = vpack.c.bf16 %v1011_v63, %v1011_v63 }
 0x4e5   :  { %1407 = vmatmul.msk.bf16.vlgmr.msra.gmra.mxu2 %vm235_vm4, %v1012_v0 }
 0x568   :  { %v1077_v2 = vpop.f32.mrf.mxu2 }
 0x569   :  { %v1078_v3 = vadd.f32 %v1600_v1, %v1077_v2 }
 0x56b   :  { %v1081_v4 = vmax.f32 %v1078_v3, 0.0 }
 0x56d   :  { %1083 = vst.msk [vmem:[#allocation3] sm:$0x7] %vm1082_vm9, %v1081_v4 }
 0x570   :  { %v1079_v5 = vpop.f32.mrf.mxu2 }
 0x574   :  { %v1084_v6 = vld [vmem:[#allocation3] sm:$0x7] }
 0x575   :  { %v1090_v7 = vrot.slane %v1084_v6, 2  ;;  %v1086_v9 = vrot.slane %v1084_v6, 1 }
 0x577   :  { %1091 = vrot.lane.b32.xlu2 %v1090_v7, %s1603_s29  ;;  %1087 = vrot.lane.b32.xlu1 %v1086_v9, %s1602_s27 }
 0x5d1   :  { %v1092_v17 = vpop.permute.xlu2 %1091 }
 0x5e9   :  { %v1088_v16 = vpop.permute.xlu1 %1087 }
 0x5ea   :  { %v1094_v18 = vsel %vm225_vm2, %v1084_v6, %v1088_v16 }
 0x5eb   :  { %v1095_v19 = vsel %vm230_vm3, %v1094_v18, %v1092_v17 }
 0x5ec   :  { %v1096_v20 = vpack.c.bf16 %v1095_v19, %v1095_v19 }
 0x5ee   :  { %1432 = vmatmul.msk.bf16.vlgmr.msra.gmra.mxu3 %vm235_vm4, %v1096_v20 }
 0x671   :  { %v1158_v22 = vpop.f32.mrf.mxu3 }
 0x672   :  { %v1159_v8 = vadd.f32 %v1158_v22, %v1109_v21 }
 0x674   :  { %1164 = vst.msk [vmem:[%s2074_s13] sm:$0x1] %vm1163_vm10, %v1159_v8 }
 0x679   :  { %v1160_v23 = vpop.f32.mrf.mxu3 }

</bundles_post_ra>
